<compile_context>
chip_gen: v6e
topology: v6e:2x2x1
jax: 0.10.0
libtpu: 0.0.40
codegen_flags: <defaults>
</compile_context>

<pallas_src>
import functools
import math

import jax
import jax.numpy as jnp
from jax import lax
from jax.experimental import pallas as pl
from jax.experimental.pallas import tpu as pltpu

# ----------------------------- configuration ------------------------------
D_MODEL = 32        # d_model
NHEAD = 4           # nhead
HEAD_DIM = D_MODEL // NHEAD
DIM_FF = 64         # dim_feedforward
NUM_Q = 8           # num_queries (tgt sequence length)
NUM_M = 16          # H*W         (memory sequence length)
BATCH = 2
EPS = 1e-5
NEG_INF = -1e30
LANES = 128

SQ = NUM_Q * BATCH          # 16 flattened (query, batch) rows
SM = NUM_M * BATCH          # 32 flattened (memory, batch) rows

# ------------- parameter/mask slab row layout (packed once) ----------------
ROW_SA_W = 0                          # [D, 4D]  Wq | Wk | Wv | Wo
ROW_CA_W = ROW_SA_W + D_MODEL         # [D, 4D]
ROW_MASK = ROW_CA_W + D_MODEL         # [H*SQ, .] head_mask | bias_self | bias_cross
ROW_FF_W1 = ROW_MASK + NHEAD * SQ     # [D, F]
ROW_FF_W2 = ROW_FF_W1 + D_MODEL       # [F, D]
ROW_FF_B1 = ROW_FF_W2 + DIM_FF        # [1, F]
ROW_VEC = ROW_FF_B1 + 1               # [15, D]  biases + LayerNorm params
N_SLAB_ROWS = ROW_VEC + 15            # 240

# vec row indices (relative to ROW_VEC)
(V_SA_BQ, V_SA_BK, V_SA_BV, V_SA_BO,
 V_CA_BQ, V_CA_BK, V_CA_BV, V_CA_BO,
 V_FF_B2,
 V_N1_G, V_N1_B, V_N2_G, V_N2_B, V_N3_G, V_N3_B) = range(15)


# ------------------------------- kernel -----------------------------------
def decoder_layer_kernel(acts_ref, p_ref, out_ref, *, nhead, batch, num_q, num_m):
    D = out_ref.shape[-1]
    H, B = nhead, batch
    Sq = num_q * B              # query rows (flattened (q, b))
    Sm = num_m * B              # memory rows (flattened (m, b))
    F = DIM_FF
    hd = D // H
    scale = 1.0 / math.sqrt(hd)

    def vec(k):
        # Single bias / LayerNorm parameter row, read at point of use.
        return p_ref[ROW_VEC + k:ROW_VEC + k + 1, 0:D]

    def layernorm(x, g, b):
        mu = jnp.mean(x, axis=-1, keepdims=True)
        var = jnp.mean((x - mu) ** 2, axis=-1, keepdims=True)
        return (x - mu) * lax.rsqrt(var + EPS) * g + b

    def attend(qp, kp, vp, wo, bo, bias):
        # qp: [Sq, D], kp/vp: [Sk, D]; all heads + both batches in one shot.
        # Precomputed head_mask keeps only head h's lanes in stacked block h.
        head_mask = p_ref[ROW_MASK:ROW_MASK + H * Sq, 0:D]          # [H*Sq, D]
        q_stack = jnp.broadcast_to(qp[None, :, :], (H, Sq, D)).reshape(H * Sq, D)
        q_stack = q_stack * head_mask
        # Scores: contract last dims of both operands (no explicit k.T).
        s = lax.dot_general(q_stack, kp, (((1,), (1,)), ((), ())),
                            preferred_element_type=jnp.float32)     # [H*Sq, Sk]
        s = s * scale + bias
        s = s - jnp.max(s, axis=-1, keepdims=True)
        p = jnp.exp(s)
        denom = jnp.sum(p, axis=-1, keepdims=True)
        inv = pl.reciprocal(denom, approx=True)
        inv = inv * (2.0 - denom * inv)     # one Newton step -> ~exact 1/denom
        p = p * inv
        o_full = jnp.dot(p, vp, preferred_element_type=jnp.float32) * head_mask
        o = o_full[0:Sq]
        for h in range(1, H):               # masked head-sum (H-1 adds, no concat)
            o = o + o_full[h * Sq:(h + 1) * Sq]
        return jnp.dot(o, wo, preferred_element_type=jnp.float32) + bo

    tgt = acts_ref[0:Sq, :]
    qpos = acts_ref[Sq:2 * Sq, :]
    mem = acts_ref[2 * Sq:2 * Sq + Sm, :]
    pos = acts_ref[2 * Sq + Sm:2 * Sq + 2 * Sm, :]

    # ----- cross-attention K/V projection (independent of t) hoisted first ---
    kv = jnp.dot(jnp.concatenate([mem + pos, mem], axis=0),
                 p_ref[ROW_CA_W:ROW_CA_W + D, D:3 * D],
                 preferred_element_type=jnp.float32)                 # [2*Sm, 2D]
    ca_kp = kv[0:Sm, 0:D] + vec(V_CA_BK)
    ca_vp = kv[Sm:2 * Sm, D:2 * D] + vec(V_CA_BV)

    # ----- self attention: q = k = tgt + query_pos, v = tgt -----
    x_qk = tgt + qpos
    y = jnp.dot(jnp.concatenate([x_qk, tgt], axis=0),
                p_ref[ROW_SA_W:ROW_SA_W + D, 0:3 * D],
                preferred_element_type=jnp.float32)                  # [2*Sq, 3D]
    qp = y[0:Sq, 0:D] + vec(V_SA_BQ)
    kp = y[0:Sq, D:2 * D] + vec(V_SA_BK)
    vp = y[Sq:2 * Sq, 2 * D:3 * D] + vec(V_SA_BV)
    bias_self = p_ref[ROW_MASK:ROW_MASK + H * Sq, D:D + Sq]          # [H*Sq, Sq]
    t2 = attend(qp, kp, vp, p_ref[ROW_SA_W:ROW_SA_W + D, 3 * D:4 * D],
                vec(V_SA_BO), bias_self)
    t = layernorm(tgt + t2, vec(V_N1_G), vec(V_N1_B))

    # ----- cross attention: q = t + query_pos (K/V projected above) -----
    cq = jnp.dot(t + qpos, p_ref[ROW_CA_W:ROW_CA_W + D, 0:D],
                 preferred_element_type=jnp.float32) + vec(V_CA_BQ)
    bias_cross = p_ref[ROW_MASK:ROW_MASK + H * Sq, D + Sq:D + Sq + Sm]
    t2 = attend(cq, ca_kp, ca_vp, p_ref[ROW_CA_W:ROW_CA_W + D, 3 * D:4 * D],
                vec(V_CA_BO), bias_cross)
    t = layernorm(t + t2, vec(V_N2_G), vec(V_N2_B))

    # ----- feed-forward: Linear -> ReLU -> Linear -----
    h1 = jnp.dot(t, p_ref[ROW_FF_W1:ROW_FF_W1 + D, 0:F],
                 preferred_element_type=jnp.float32)
    h1 = jnp.maximum(h1 + p_ref[ROW_FF_B1:ROW_FF_B1 + 1, 0:F], 0.0)
    t2 = jnp.dot(h1, p_ref[ROW_FF_W2:ROW_FF_W2 + F, 0:D],
                 preferred_element_type=jnp.float32) + vec(V_FF_B2)
    t = layernorm(t + t2, vec(V_N3_G), vec(V_N3_B))

    out_ref[...] = t.astype(out_ref.dtype)


# ------------------------------- wrapper -----------------------------------
def pack_params(p):
    """Pack the 26 parameter tensors + constant masks into ONE lane-dense slab."""
    D, H, B = D_MODEL, NHEAD, BATCH
    Sq, Sm, hd = SQ, SM, HEAD_DIM

    def pad_lanes(x):
        return jnp.pad(x, ((0, 0), (0, LANES - x.shape[1])))

    sa_w = jnp.concatenate([p["sa_wq"], p["sa_wk"], p["sa_wv"], p["sa_wo"]], axis=1)
    ca_w = jnp.concatenate([p["ca_wq"], p["ca_wk"], p["ca_wv"], p["ca_wo"]], axis=1)

    # Input-independent masks, precomputed on the host (not in the kernel):
    #   head_mask[h*Sq + r, d] = 1  iff lane d belongs to head h
    #   bias_*[i, j] = 0 if row i and key j are the same batch element else -1e30
    r = jnp.arange(H * Sq)
    head_mask = (r[:, None] // Sq == jnp.arange(D)[None, :] // hd).astype(jnp.float32)
    bias_self = jnp.where(r[:, None] % B == jnp.arange(Sq)[None, :] % B, 0.0, NEG_INF)
    bias_cross = jnp.where(r[:, None] % B == jnp.arange(Sm)[None, :] % B, 0.0, NEG_INF)
    mask_slab = pad_lanes(jnp.concatenate([head_mask, bias_self, bias_cross], axis=1))

    vec_rows = jnp.concatenate(
        [p["sa_bq"], p["sa_bk"], p["sa_bv"], p["sa_bo"],
         p["ca_bq"], p["ca_bk"], p["ca_bv"], p["ca_bo"],
         p["ffn_b2"],
         p["n1_g"], p["n1_b"], p["n2_g"], p["n2_b"], p["n3_g"], p["n3_b"]], axis=0)

    slab = jnp.concatenate(
        [sa_w, ca_w, mask_slab,
         pad_lanes(p["ffn_w1"]), pad_lanes(p["ffn_w2"]),
         pad_lanes(p["ffn_b1"]), pad_lanes(vec_rows)], axis=0).astype(jnp.float32)
    assert slab.shape == (N_SLAB_ROWS, LANES), slab.shape
    return slab


def decoder_layer(tgt, memory, query_pos, pos, slab):
    """tgt/query_pos: [Q, B, D]; memory/pos: [M, B, D] (PyTorch seq-major)."""
    Q, B, D = tgt.shape
    M = memory.shape[0]
    assert B & (B - 1) == 0, "batch mask uses parity of flattened rows (B = 2**k)"

    # Free reshapes (seq-major [S, B, D] -> [S*B, D], no transposes) stacked
    # into a single activation slab -> exactly 2 input DMAs for the kernel.
    acts = jnp.concatenate(
        [tgt.reshape(Q * B, D), query_pos.reshape(Q * B, D),
         memory.reshape(M * B, D), pos.reshape(M * B, D)], axis=0)

    vmem = pl.BlockSpec(memory_space=pltpu.MemorySpace.VMEM)
    out2 = pl.pallas_call(
        functools.partial(decoder_layer_kernel, nhead=NHEAD, batch=B,
                          num_q=Q, num_m=M),
        out_shape=jax.ShapeDtypeStruct((Q * B, D), jnp.float32),
        in_specs=[vmem, vmem],
        out_specs=vmem,
    )(acts, slab)

    return out2.reshape(Q, B, D)


# --------------------------- pure-JAX reference ----------------------------
def ref_mha(q_in, k_in, v_in, wq, bq, wk, bk, wv, bv, wo, bo):
    B, Sq, D = q_in.shape
    Sk = k_in.shape[1]
    hd = D // NHEAD
    qp = (q_in @ wq + bq).reshape(B, Sq, NHEAD, hd)
    kp = (k_in @ wk + bk).reshape(B, Sk, NHEAD, hd)
    vp = (v_in @ wv + bv).reshape(B, Sk, NHEAD, hd)
    s = jnp.einsum("bqhd,bkhd->bhqk", qp, kp) / math.sqrt(hd)
    p = jax.nn.softmax(s, axis=-1)
    o = jnp.einsum("bhqk,bkhd->bqhd", p, vp).reshape(B, Sq, D)
    return o @ wo + bo


def ref_layernorm(x, g, b):
    mu = jnp.mean(x, axis=-1, keepdims=True)
    var = jnp.mean((x - mu) ** 2, axis=-1, keepdims=True)
    return (x - mu) * jax.lax.rsqrt(var + EPS) * g + b


def ref_decoder_layer(tgt, memory, query_pos, pos, p):
    t = jnp.transpose(tgt, (1, 0, 2))
    qp = jnp.transpose(query_pos, (1, 0, 2))
    m = jnp.transpose(memory, (1, 0, 2))
    mp = jnp.transpose(pos, (1, 0, 2))

    qk = t + qp
    t2 = ref_mha(qk, qk, t, p["sa_wq"], p["sa_bq"], p["sa_wk"], p["sa_bk"],
                 p["sa_wv"], p["sa_bv"], p["sa_wo"], p["sa_bo"])
    t = ref_layernorm(t + t2, p["n1_g"], p["n1_b"])

    t2 = ref_mha(t + qp, m + mp, m, p["ca_wq"], p["ca_bq"], p["ca_wk"],
                 p["ca_bk"], p["ca_wv"], p["ca_bv"], p["ca_wo"], p["ca_bo"])
    t = ref_layernorm(t + t2, p["n2_g"], p["n2_b"])

    h = jnp.maximum(t @ p["ffn_w1"] + p["ffn_b1"], 0.0)
    t2 = h @ p["ffn_w2"] + p["ffn_b2"]
    t = ref_layernorm(t + t2, p["n3_g"], p["n3_b"])
    return jnp.transpose(t, (1, 0, 2))


# ------------------------------- main --------------------------------------
def init_params(key):
    ks = iter(jax.random.split(key, 64))
    p = {}

    def w(shape, scale=0.05):
        return (scale * jax.random.normal(next(ks), shape)).astype(jnp.float32)

    # attention weights (already transposed to [in, out] for x @ W)
    for pre in ("sa", "ca"):
        p[f"{pre}_wq"] = w((D_MODEL, D_MODEL))
        p[f"{pre}_wk"] = w((D_MODEL, D_MODEL))
        p[f"{pre}_wv"] = w((D_MODEL, D_MODEL))
        p[f"{pre}_wo"] = w((D_MODEL, D_MODEL))
        p[f"{pre}_bq"] = w((1, D_MODEL), 0.02)
        p[f"{pre}_bk"] = w((1, D_MODEL), 0.02)
        p[f"{pre}_bv"] = w((1, D_MODEL), 0.02)
        p[f"{pre}_bo"] = w((1, D_MODEL), 0.02)

    p["ffn_w1"] = w((D_MODEL, DIM_FF))
    p["ffn_b1"] = w((1, DIM_FF), 0.02)
    p["ffn_w2"] = w((DIM_FF, D_MODEL))
    p["ffn_b2"] = w((1, D_MODEL), 0.02)

    for i in (1, 2, 3):
        p[f"n{i}_g"] = jnp.ones((1, D_MODEL), jnp.float32)
        p[f"n{i}_b"] = jnp.zeros((1, D_MODEL), jnp.float32)
    return p


if __name__ == "__main__":
    key = jax.random.PRNGKey(0)
    k_in, k_par = jax.random.split(key)
    k1, k2, k3, k4 = jax.random.split(k_in, 4)

    tgt = jax.random.normal(k1, (NUM_Q, BATCH, D_MODEL), jnp.float32)
    memory = jax.random.normal(k2, (NUM_M, BATCH, D_MODEL), jnp.float32)
    query_pos = jax.random.normal(k3, (NUM_Q, BATCH, D_MODEL), jnp.float32)
    pos = jax.random.normal(k4, (NUM_M, BATCH, D_MODEL), jnp.float32)

    params = init_params(k_par)
    slab = pack_params(params)              # one-time packing, off the hot path

    fwd = jax.jit(decoder_layer)
    out = jax.block_until_ready(fwd(tgt, memory, query_pos, pos, slab))

    ref = ref_decoder_layer(tgt, memory, query_pos, pos, params)
    assert out.shape == (NUM_Q, BATCH, D_MODEL)
    assert jnp.allclose(out, ref, atol=2e-4, rtol=2e-4), "mismatch vs reference"

    print("KERNEL_OK")
</pallas_src>

<mosaic_0001>
module attributes {stable_mosaic.version = 11 : i64} {
  func.func @decoder_layer_kernel(%arg0: memref<96x32xf32, #tpu.memory_space<vmem>>, %arg1: memref<240x128xf32, #tpu.memory_space<vmem>>, %arg2: memref<16x32xf32, #tpu.memory_space<vmem>>) attributes {dimension_semantics = [], scalar_prefetch = 0 : i64, scratch_operands = 0 : i64, tpu.core_type = #tpu.core_type<tc>} {
    %c0 = arith.constant 0 : index
    %c0_0 = arith.constant 0 : index
    %0 = vector.load %arg0[%c0, %c0_0] : memref<96x32xf32, #tpu.memory_space<vmem>>, vector<16x32xf32>
    %c16 = arith.constant 16 : index
    %c0_1 = arith.constant 0 : index
    %1 = vector.load %arg0[%c16, %c0_1] : memref<96x32xf32, #tpu.memory_space<vmem>>, vector<16x32xf32>
    %c32 = arith.constant 32 : index
    %c0_2 = arith.constant 0 : index
    %2 = vector.load %arg0[%c32, %c0_2] : memref<96x32xf32, #tpu.memory_space<vmem>>, vector<32x32xf32>
    %c64 = arith.constant 64 : index
    %c0_3 = arith.constant 0 : index
    %3 = vector.load %arg0[%c64, %c0_3] : memref<96x32xf32, #tpu.memory_space<vmem>>, vector<32x32xf32>
    %4 = arith.addf %2, %3 : vector<32x32xf32>
    %5 = tpu.concatenate %4, %2 in 0 : vector<32x32xf32>, vector<32x32xf32> -> vector<64x32xf32>
    %c32_4 = arith.constant 32 : index
    %c32_5 = arith.constant 32 : index
    %6 = vector.load %arg1[%c32_4, %c32_5] : memref<240x128xf32, #tpu.memory_space<vmem>>, vector<32x64xf32>
    %cst = arith.constant dense<0.000000e+00> : vector<64x64xf32>
    %7 = tpu.matmul %5, %6, %cst {dimension_numbers = #tpu.dot_dimension_numbers<[1], [0], [0], [1], [0, 0, 1, 1], [], []>} : vector<64x32xf32>, vector<32x64xf32>, vector<64x64xf32> -> vector<64x64xf32>
    %8 = vector.extract_strided_slice %7 {offsets = [0, 0], sizes = [32, 32], strides = [1, 1]} : vector<64x64xf32> to vector<32x32xf32>
    %c230 = arith.constant 230 : index
    %c0_6 = arith.constant 0 : index
    %9 = vector.load %arg1[%c230, %c0_6] : memref<240x128xf32, #tpu.memory_space<vmem>>, vector<1x32xf32>
    %10 = vector.broadcast %9 : vector<1x32xf32> to vector<32x32xf32>
    %11 = arith.addf %8, %10 : vector<32x32xf32>
    %12 = vector.extract_strided_slice %7 {offsets = [32, 32], sizes = [32, 32], strides = [1, 1]} : vector<64x64xf32> to vector<32x32xf32>
    %c231 = arith.constant 231 : index
    %c0_7 = arith.constant 0 : index
    %13 = vector.load %arg1[%c231, %c0_7] : memref<240x128xf32, #tpu.memory_space<vmem>>, vector<1x32xf32>
    %14 = vector.broadcast %13 : vector<1x32xf32> to vector<32x32xf32>
    %15 = arith.addf %12, %14 : vector<32x32xf32>
    %16 = arith.addf %0, %1 : vector<16x32xf32>
    %17 = tpu.concatenate %16, %0 in 0 : vector<16x32xf32>, vector<16x32xf32> -> vector<32x32xf32>
    %c0_8 = arith.constant 0 : index
    %c0_9 = arith.constant 0 : index
    %18 = vector.load %arg1[%c0_8, %c0_9] : memref<240x128xf32, #tpu.memory_space<vmem>>, vector<32x96xf32>
    %cst_10 = arith.constant dense<0.000000e+00> : vector<32x96xf32>
    %19 = tpu.matmul %17, %18, %cst_10 {dimension_numbers = #tpu.dot_dimension_numbers<[1], [0], [0], [1], [0, 0, 1, 1], [], []>} : vector<32x32xf32>, vector<32x96xf32>, vector<32x96xf32> -> vector<32x96xf32>
    %20 = vector.extract_strided_slice %19 {offsets = [0, 0], sizes = [16, 32], strides = [1, 1]} : vector<32x96xf32> to vector<16x32xf32>
    %c225 = arith.constant 225 : index
    %c0_11 = arith.constant 0 : index
    %21 = vector.load %arg1[%c225, %c0_11] : memref<240x128xf32, #tpu.memory_space<vmem>>, vector<1x32xf32>
    %22 = vector.broadcast %21 : vector<1x32xf32> to vector<16x32xf32>
    %23 = arith.addf %20, %22 : vector<16x32xf32>
    %24 = vector.extract_strided_slice %19 {offsets = [0, 32], sizes = [16, 32], strides = [1, 1]} : vector<32x96xf32> to vector<16x32xf32>
    %c226 = arith.constant 226 : index
    %c0_12 = arith.constant 0 : index
    %25 = vector.load %arg1[%c226, %c0_12] : memref<240x128xf32, #tpu.memory_space<vmem>>, vector<1x32xf32>
    %26 = vector.broadcast %25 : vector<1x32xf32> to vector<16x32xf32>
    %27 = arith.addf %24, %26 : vector<16x32xf32>
    %28 = vector.extract_strided_slice %19 {offsets = [16, 64], sizes = [16, 32], strides = [1, 1]} : vector<32x96xf32> to vector<16x32xf32>
    %c227 = arith.constant 227 : index
    %c0_13 = arith.constant 0 : index
    %29 = vector.load %arg1[%c227, %c0_13] : memref<240x128xf32, #tpu.memory_space<vmem>>, vector<1x32xf32>
    %30 = vector.broadcast %29 : vector<1x32xf32> to vector<16x32xf32>
    %31 = arith.addf %28, %30 : vector<16x32xf32>
    %c64_14 = arith.constant 64 : index
    %c32_15 = arith.constant 32 : index
    %32 = vector.load %arg1[%c64_14, %c32_15] : memref<240x128xf32, #tpu.memory_space<vmem>>, vector<64x16xf32>
    %c0_16 = arith.constant 0 : index
    %c96 = arith.constant 96 : index
    %33 = vector.load %arg1[%c0_16, %c96] : memref<240x128xf32, #tpu.memory_space<vmem>>, vector<32x32xf32>
    %c228 = arith.constant 228 : index
    %c0_17 = arith.constant 0 : index
    %34 = vector.load %arg1[%c228, %c0_17] : memref<240x128xf32, #tpu.memory_space<vmem>>, vector<1x32xf32>
    %c64_18 = arith.constant 64 : index
    %c0_19 = arith.constant 0 : index
    %35 = vector.load %arg1[%c64_18, %c0_19] : memref<240x128xf32, #tpu.memory_space<vmem>>, vector<64x32xf32>
    %36 = vector.shape_cast %23 : vector<16x32xf32> to vector<1x16x32xf32>
    %37 = vector.shape_cast %36 : vector<1x16x32xf32> to vector<1x16x32xf32>
    %38 = vector.broadcast %37 : vector<1x16x32xf32> to vector<4x16x32xf32>
    %39 = vector.shape_cast %38 : vector<4x16x32xf32> to vector<64x32xf32>
    %40 = arith.mulf %39, %35 : vector<64x32xf32>
    %cst_20 = arith.constant dense<0.000000e+00> : vector<64x16xf32>
    %41 = tpu.matmul %40, %27, %cst_20 {dimension_numbers = #tpu.dot_dimension_numbers<[1], [1], [0], [0], [0, 0, 1, 0], [], []>} : vector<64x32xf32>, vector<16x32xf32>, vector<64x16xf32> -> vector<64x16xf32>
    %cst_21 = arith.constant 0.353553385 : f32
    %42 = vector.broadcast %cst_21 : f32 to vector<64x16xf32>
    %43 = arith.mulf %41, %42 : vector<64x16xf32>
    %44 = arith.addf %43, %32 : vector<64x16xf32>
    %cst_22 = arith.constant dense<0xFF800000> : vector<64xf32>
    %45 = vector.multi_reduction <maximumf>, %44, %cst_22 [1] : vector<64x16xf32> to vector<64xf32>
    %46 = vector.shape_cast %45 : vector<64xf32> to vector<64x1xf32>
    %47 = vector.broadcast %46 : vector<64x1xf32> to vector<64x16xf32>
    %48 = arith.subf %44, %47 : vector<64x16xf32>
    %49 = math.exp %48 : vector<64x16xf32>
    %cst_23 = arith.constant dense<0.000000e+00> : vector<64xf32>
    %50 = vector.multi_reduction <add>, %49, %cst_23 [1] : vector<64x16xf32> to vector<64xf32>
    %51 = vector.shape_cast %50 : vector<64xf32> to vector<64x1xf32>
    %52 = tpu.reciprocal %51 {approx = true} : vector<64x1xf32> -> vector<64x1xf32>
    %53 = arith.mulf %51, %52 : vector<64x1xf32>
    %cst_24 = arith.constant 2.000000e+00 : f32
    %54 = vector.broadcast %cst_24 : f32 to vector<64x1xf32>
    %55 = arith.subf %54, %53 : vector<64x1xf32>
    %56 = arith.mulf %52, %55 : vector<64x1xf32>
    %57 = vector.broadcast %56 : vector<64x1xf32> to vector<64x16xf32>
    %58 = arith.mulf %49, %57 : vector<64x16xf32>
    %cst_25 = arith.constant dense<0.000000e+00> : vector<64x32xf32>
    %59 = tpu.matmul %58, %31, %cst_25 {dimension_numbers = #tpu.dot_dimension_numbers<[1], [0], [0], [1], [0, 0, 1, 1], [], []>} : vector<64x16xf32>, vector<16x32xf32>, vector<64x32xf32> -> vector<64x32xf32>
    %60 = arith.mulf %59, %35 : vector<64x32xf32>
    %61 = vector.extract_strided_slice %60 {offsets = [0, 0], sizes = [16, 32], strides = [1, 1]} : vector<64x32xf32> to vector<16x32xf32>
    %62 = vector.extract_strided_slice %60 {offsets = [16, 0], sizes = [16, 32], strides = [1, 1]} : vector<64x32xf32> to vector<16x32xf32>
    %63 = arith.addf %61, %62 : vector<16x32xf32>
    %64 = vector.extract_strided_slice %60 {offsets = [32, 0], sizes = [16, 32], strides = [1, 1]} : vector<64x32xf32> to vector<16x32xf32>
    %65 = arith.addf %63, %64 : vector<16x32xf32>
    %66 = vector.extract_strided_slice %60 {offsets = [48, 0], sizes = [16, 32], strides = [1, 1]} : vector<64x32xf32> to vector<16x32xf32>
    %67 = arith.addf %65, %66 : vector<16x32xf32>
    %cst_26 = arith.constant dense<0.000000e+00> : vector<16x32xf32>
    %68 = tpu.matmul %67, %33, %cst_26 {dimension_numbers = #tpu.dot_dimension_numbers<[1], [0], [0], [1], [0, 0, 1, 1], [], []>} : vector<16x32xf32>, vector<32x32xf32>, vector<16x32xf32> -> vector<16x32xf32>
    %69 = vector.broadcast %34 : vector<1x32xf32> to vector<16x32xf32>
    %70 = arith.addf %68, %69 : vector<16x32xf32>
    %71 = arith.addf %0, %70 : vector<16x32xf32>
    %c234 = arith.constant 234 : index
    %c0_27 = arith.constant 0 : index
    %72 = vector.load %arg1[%c234, %c0_27] : memref<240x128xf32, #tpu.memory_space<vmem>>, vector<1x32xf32>
    %c235 = arith.constant 235 : index
    %c0_28 = arith.constant 0 : index
    %73 = vector.load %arg1[%c235, %c0_28] : memref<240x128xf32, #tpu.memory_space<vmem>>, vector<1x32xf32>
    %cst_29 = arith.constant dense<0.000000e+00> : vector<16xf32>
    %74 = vector.multi_reduction <add>, %71, %cst_29 [1] : vector<16x32xf32> to vector<16xf32>
    %75 = vector.shape_cast %74 : vector<16xf32> to vector<16x1xf32>
    %cst_30 = arith.constant 3.200000e+01 : f32
    %76 = vector.broadcast %cst_30 : f32 to vector<16x1xf32>
    %77 = arith.divf %75, %76 : vector<16x1xf32>
    %78 = vector.broadcast %77 : vector<16x1xf32> to vector<16x32xf32>
    %79 = arith.subf %71, %78 : vector<16x32xf32>
    %80 = arith.mulf %79, %79 : vector<16x32xf32>
    %cst_31 = arith.constant dense<0.000000e+00> : vector<16xf32>
    %81 = vector.multi_reduction <add>, %80, %cst_31 [1] : vector<16x32xf32> to vector<16xf32>
    %82 = vector.shape_cast %81 : vector<16xf32> to vector<16x1xf32>
    %cst_32 = arith.constant 3.200000e+01 : f32
    %83 = vector.broadcast %cst_32 : f32 to vector<16x1xf32>
    %84 = arith.divf %82, %83 : vector<16x1xf32>
    %85 = vector.broadcast %77 : vector<16x1xf32> to vector<16x32xf32>
    %86 = arith.subf %71, %85 : vector<16x32xf32>
    %cst_33 = arith.constant 9.99999974E-6 : f32
    %87 = vector.broadcast %cst_33 : f32 to vector<16x1xf32>
    %88 = arith.addf %84, %87 : vector<16x1xf32>
    %89 = math.rsqrt %88 : vector<16x1xf32>
    %90 = vector.broadcast %89 : vector<16x1xf32> to vector<16x32xf32>
    %91 = arith.mulf %86, %90 : vector<16x32xf32>
    %92 = vector.broadcast %72 : vector<1x32xf32> to vector<16x32xf32>
    %93 = arith.mulf %91, %92 : vector<16x32xf32>
    %94 = vector.broadcast %73 : vector<1x32xf32> to vector<16x32xf32>
    %95 = arith.addf %93, %94 : vector<16x32xf32>
    %96 = arith.addf %95, %1 : vector<16x32xf32>
    %c32_34 = arith.constant 32 : index
    %c0_35 = arith.constant 0 : index
    %97 = vector.load %arg1[%c32_34, %c0_35] : memref<240x128xf32, #tpu.memory_space<vmem>>, vector<32x32xf32>
    %cst_36 = arith.constant dense<0.000000e+00> : vector<16x32xf32>
    %98 = tpu.matmul %96, %97, %cst_36 {dimension_numbers = #tpu.dot_dimension_numbers<[1], [0], [0], [1], [0, 0, 1, 1], [], []>} : vector<16x32xf32>, vector<32x32xf32>, vector<16x32xf32> -> vector<16x32xf32>
    %c229 = arith.constant 229 : index
    %c0_37 = arith.constant 0 : index
    %99 = vector.load %arg1[%c229, %c0_37] : memref<240x128xf32, #tpu.memory_space<vmem>>, vector<1x32xf32>
    %100 = vector.broadcast %99 : vector<1x32xf32> to vector<16x32xf32>
    %101 = arith.addf %98, %100 : vector<16x32xf32>
    %c64_38 = arith.constant 64 : index
    %c48 = arith.constant 48 : index
    %102 = vector.load %arg1[%c64_38, %c48] : memref<240x128xf32, #tpu.memory_space<vmem>>, vector<64x32xf32>
    %c32_39 = arith.constant 32 : index
    %c96_40 = arith.constant 96 : index
    %103 = vector.load %arg1[%c32_39, %c96_40] : memref<240x128xf32, #tpu.memory_space<vmem>>, vector<32x32xf32>
    %c232 = arith.constant 232 : index
    %c0_41 = arith.constant 0 : index
    %104 = vector.load %arg1[%c232, %c0_41] : memref<240x128xf32, #tpu.memory_space<vmem>>, vector<1x32xf32>
    %c64_42 = arith.constant 64 : index
    %c0_43 = arith.constant 0 : index
    %105 = vector.load %arg1[%c64_42, %c0_43] : memref<240x128xf32, #tpu.memory_space<vmem>>, vector<64x32xf32>
    %106 = vector.shape_cast %101 : vector<16x32xf32> to vector<1x16x32xf32>
    %107 = vector.shape_cast %106 : vector<1x16x32xf32> to vector<1x16x32xf32>
    %108 = vector.broadcast %107 : vector<1x16x32xf32> to vector<4x16x32xf32>
    %109 = vector.shape_cast %108 : vector<4x16x32xf32> to vector<64x32xf32>
    %110 = arith.mulf %109, %105 : vector<64x32xf32>
    %cst_44 = arith.constant dense<0.000000e+00> : vector<64x32xf32>
    %111 = tpu.matmul %110, %11, %cst_44 {dimension_numbers = #tpu.dot_dimension_numbers<[1], [1], [0], [0], [0, 0, 1, 0], [], []>} : vector<64x32xf32>, vector<32x32xf32>, vector<64x32xf32> -> vector<64x32xf32>
    %cst_45 = arith.constant 0.353553385 : f32
    %112 = vector.broadcast %cst_45 : f32 to vector<64x32xf32>
    %113 = arith.mulf %111, %112 : vector<64x32xf32>
    %114 = arith.addf %113, %102 : vector<64x32xf32>
    %cst_46 = arith.constant dense<0xFF800000> : vector<64xf32>
    %115 = vector.multi_reduction <maximumf>, %114, %cst_46 [1] : vector<64x32xf32> to vector<64xf32>
    %116 = vector.shape_cast %115 : vector<64xf32> to vector<64x1xf32>
    %117 = vector.broadcast %116 : vector<64x1xf32> to vector<64x32xf32>
    %118 = arith.subf %114, %117 : vector<64x32xf32>
    %119 = math.exp %118 : vector<64x32xf32>
    %cst_47 = arith.constant dense<0.000000e+00> : vector<64xf32>
    %120 = vector.multi_reduction <add>, %119, %cst_47 [1] : vector<64x32xf32> to vector<64xf32>
    %121 = vector.shape_cast %120 : vector<64xf32> to vector<64x1xf32>
    %122 = tpu.reciprocal %121 {approx = true} : vector<64x1xf32> -> vector<64x1xf32>
    %123 = arith.mulf %121, %122 : vector<64x1xf32>
    %cst_48 = arith.constant 2.000000e+00 : f32
    %124 = vector.broadcast %cst_48 : f32 to vector<64x1xf32>
    %125 = arith.subf %124, %123 : vector<64x1xf32>
    %126 = arith.mulf %122, %125 : vector<64x1xf32>
    %127 = vector.broadcast %126 : vector<64x1xf32> to vector<64x32xf32>
    %128 = arith.mulf %119, %127 : vector<64x32xf32>
    %cst_49 = arith.constant dense<0.000000e+00> : vector<64x32xf32>
    %129 = tpu.matmul %128, %15, %cst_49 {dimension_numbers = #tpu.dot_dimension_numbers<[1], [0], [0], [1], [0, 0, 1, 1], [], []>} : vector<64x32xf32>, vector<32x32xf32>, vector<64x32xf32> -> vector<64x32xf32>
    %130 = arith.mulf %129, %105 : vector<64x32xf32>
    %131 = vector.extract_strided_slice %130 {offsets = [0, 0], sizes = [16, 32], strides = [1, 1]} : vector<64x32xf32> to vector<16x32xf32>
    %132 = vector.extract_strided_slice %130 {offsets = [16, 0], sizes = [16, 32], strides = [1, 1]} : vector<64x32xf32> to vector<16x32xf32>
    %133 = arith.addf %131, %132 : vector<16x32xf32>
    %134 = vector.extract_strided_slice %130 {offsets = [32, 0], sizes = [16, 32], strides = [1, 1]} : vector<64x32xf32> to vector<16x32xf32>
    %135 = arith.addf %133, %134 : vector<16x32xf32>
    %136 = vector.extract_strided_slice %130 {offsets = [48, 0], sizes = [16, 32], strides = [1, 1]} : vector<64x32xf32> to vector<16x32xf32>
    %137 = arith.addf %135, %136 : vector<16x32xf32>
    %cst_50 = arith.constant dense<0.000000e+00> : vector<16x32xf32>
    %138 = tpu.matmul %137, %103, %cst_50 {dimension_numbers = #tpu.dot_dimension_numbers<[1], [0], [0], [1], [0, 0, 1, 1], [], []>} : vector<16x32xf32>, vector<32x32xf32>, vector<16x32xf32> -> vector<16x32xf32>
    %139 = vector.broadcast %104 : vector<1x32xf32> to vector<16x32xf32>
    %140 = arith.addf %138, %139 : vector<16x32xf32>
    %141 = arith.addf %95, %140 : vector<16x32xf32>
    %c236 = arith.constant 236 : index
    %c0_51 = arith.constant 0 : index
    %142 = vector.load %arg1[%c236, %c0_51] : memref<240x128xf32, #tpu.memory_space<vmem>>, vector<1x32xf32>
    %c237 = arith.constant 237 : index
    %c0_52 = arith.constant 0 : index
    %143 = vector.load %arg1[%c237, %c0_52] : memref<240x128xf32, #tpu.memory_space<vmem>>, vector<1x32xf32>
    %cst_53 = arith.constant dense<0.000000e+00> : vector<16xf32>
    %144 = vector.multi_reduction <add>, %141, %cst_53 [1] : vector<16x32xf32> to vector<16xf32>
    %145 = vector.shape_cast %144 : vector<16xf32> to vector<16x1xf32>
    %cst_54 = arith.constant 3.200000e+01 : f32
    %146 = vector.broadcast %cst_54 : f32 to vector<16x1xf32>
    %147 = arith.divf %145, %146 : vector<16x1xf32>
    %148 = vector.broadcast %147 : vector<16x1xf32> to vector<16x32xf32>
    %149 = arith.subf %141, %148 : vector<16x32xf32>
    %150 = arith.mulf %149, %149 : vector<16x32xf32>
    %cst_55 = arith.constant dense<0.000000e+00> : vector<16xf32>
    %151 = vector.multi_reduction <add>, %150, %cst_55 [1] : vector<16x32xf32> to vector<16xf32>
    %152 = vector.shape_cast %151 : vector<16xf32> to vector<16x1xf32>
    %cst_56 = arith.constant 3.200000e+01 : f32
    %153 = vector.broadcast %cst_56 : f32 to vector<16x1xf32>
    %154 = arith.divf %152, %153 : vector<16x1xf32>
    %155 = vector.broadcast %147 : vector<16x1xf32> to vector<16x32xf32>
    %156 = arith.subf %141, %155 : vector<16x32xf32>
    %cst_57 = arith.constant 9.99999974E-6 : f32
    %157 = vector.broadcast %cst_57 : f32 to vector<16x1xf32>
    %158 = arith.addf %154, %157 : vector<16x1xf32>
    %159 = math.rsqrt %158 : vector<16x1xf32>
    %160 = vector.broadcast %159 : vector<16x1xf32> to vector<16x32xf32>
    %161 = arith.mulf %156, %160 : vector<16x32xf32>
    %162 = vector.broadcast %142 : vector<1x32xf32> to vector<16x32xf32>
    %163 = arith.mulf %161, %162 : vector<16x32xf32>
    %164 = vector.broadcast %143 : vector<1x32xf32> to vector<16x32xf32>
    %165 = arith.addf %163, %164 : vector<16x32xf32>
    %c128 = arith.constant 128 : index
    %c0_58 = arith.constant 0 : index
    %166 = vector.load %arg1[%c128, %c0_58] : memref<240x128xf32, #tpu.memory_space<vmem>>, vector<32x64xf32>
    %cst_59 = arith.constant dense<0.000000e+00> : vector<16x64xf32>
    %167 = tpu.matmul %165, %166, %cst_59 {dimension_numbers = #tpu.dot_dimension_numbers<[1], [0], [0], [1], [0, 0, 1, 1], [], []>} : vector<16x32xf32>, vector<32x64xf32>, vector<16x64xf32> -> vector<16x64xf32>
    %c224 = arith.constant 224 : index
    %c0_60 = arith.constant 0 : index
    %168 = vector.load %arg1[%c224, %c0_60] : memref<240x128xf32, #tpu.memory_space<vmem>>, vector<1x64xf32>
    %169 = vector.broadcast %168 : vector<1x64xf32> to vector<16x64xf32>
    %170 = arith.addf %167, %169 : vector<16x64xf32>
    %cst_61 = arith.constant 0.000000e+00 : f32
    %171 = vector.broadcast %cst_61 : f32 to vector<16x64xf32>
    %172 = arith.maximumf %170, %171 : vector<16x64xf32>
    %c160 = arith.constant 160 : index
    %c0_62 = arith.constant 0 : index
    %173 = vector.load %arg1[%c160, %c0_62] : memref<240x128xf32, #tpu.memory_space<vmem>>, vector<64x32xf32>
    %cst_63 = arith.constant dense<0.000000e+00> : vector<16x32xf32>
    %174 = tpu.matmul %172, %173, %cst_63 {dimension_numbers = #tpu.dot_dimension_numbers<[1], [0], [0], [1], [0, 0, 1, 1], [], []>} : vector<16x64xf32>, vector<64x32xf32>, vector<16x32xf32> -> vector<16x32xf32>
    %c233 = arith.constant 233 : index
    %c0_64 = arith.constant 0 : index
    %175 = vector.load %arg1[%c233, %c0_64] : memref<240x128xf32, #tpu.memory_space<vmem>>, vector<1x32xf32>
    %176 = vector.broadcast %175 : vector<1x32xf32> to vector<16x32xf32>
    %177 = arith.addf %174, %176 : vector<16x32xf32>
    %178 = arith.addf %165, %177 : vector<16x32xf32>
    %c238 = arith.constant 238 : index
    %c0_65 = arith.constant 0 : index
    %179 = vector.load %arg1[%c238, %c0_65] : memref<240x128xf32, #tpu.memory_space<vmem>>, vector<1x32xf32>
    %c239 = arith.constant 239 : index
    %c0_66 = arith.constant 0 : index
    %180 = vector.load %arg1[%c239, %c0_66] : memref<240x128xf32, #tpu.memory_space<vmem>>, vector<1x32xf32>
    %cst_67 = arith.constant dense<0.000000e+00> : vector<16xf32>
    %181 = vector.multi_reduction <add>, %178, %cst_67 [1] : vector<16x32xf32> to vector<16xf32>
    %182 = vector.shape_cast %181 : vector<16xf32> to vector<16x1xf32>
    %cst_68 = arith.constant 3.200000e+01 : f32
    %183 = vector.broadcast %cst_68 : f32 to vector<16x1xf32>
    %184 = arith.divf %182, %183 : vector<16x1xf32>
    %185 = vector.broadcast %184 : vector<16x1xf32> to vector<16x32xf32>
    %186 = arith.subf %178, %185 : vector<16x32xf32>
    %187 = arith.mulf %186, %186 : vector<16x32xf32>
    %cst_69 = arith.constant dense<0.000000e+00> : vector<16xf32>
    %188 = vector.multi_reduction <add>, %187, %cst_69 [1] : vector<16x32xf32> to vector<16xf32>
    %189 = vector.shape_cast %188 : vector<16xf32> to vector<16x1xf32>
    %cst_70 = arith.constant 3.200000e+01 : f32
    %190 = vector.broadcast %cst_70 : f32 to vector<16x1xf32>
    %191 = arith.divf %189, %190 : vector<16x1xf32>
    %192 = vector.broadcast %184 : vector<16x1xf32> to vector<16x32xf32>
    %193 = arith.subf %178, %192 : vector<16x32xf32>
    %cst_71 = arith.constant 9.99999974E-6 : f32
    %194 = vector.broadcast %cst_71 : f32 to vector<16x1xf32>
    %195 = arith.addf %191, %194 : vector<16x1xf32>
    %196 = math.rsqrt %195 : vector<16x1xf32>
    %197 = vector.broadcast %196 : vector<16x1xf32> to vector<16x32xf32>
    %198 = arith.mulf %193, %197 : vector<16x32xf32>
    %199 = vector.broadcast %179 : vector<1x32xf32> to vector<16x32xf32>
    %200 = arith.mulf %198, %199 : vector<16x32xf32>
    %201 = vector.broadcast %180 : vector<1x32xf32> to vector<16x32xf32>
    %202 = arith.addf %200, %201 : vector<16x32xf32>
    %c0_72 = arith.constant 0 : index
    %c0_73 = arith.constant 0 : index
    %203 = vector.load %arg2[%c0_72, %c0_73] : memref<16x32xf32, #tpu.memory_space<vmem>>, vector<16x32xf32>
    tpu.vector_store %arg2[%c0_72, %c0_73], %202 {strides = array<i32>} : memref<16x32xf32, #tpu.memory_space<vmem>>, vector<16x32xf32>,
    return
  }
}

</mosaic_0001>

<bundles_post_ra>
// kernel: decoder_layer.1
= control target key start
LH: loop header
LB: loop body
LE: loop exit
PB: predicated region body
PF: predicated region fallthrough
CT: control target
= control target key end

     0   :  { %7 = vsyncpa [#allocation3], 0  ;;  %s2813_s0 = inlined_call_operand.vmem [shape: f32[96,32], index: 0, kind: input, shape index: {}]   ;;  %s2814_s1 = inlined_call_operand.hbm [shape: f32[240,128], index: 1, kind: input, shape index: {}]   ;;  %s2815_s2 = inlined_call_operand.hbm [shape: f32[16,32], index: 2, kind: output, shape index: {}]  }
   0x1   :  { %8 = vsyncpa [#allocation4], 0  ;;  %s2385_s9 = smov [#allocation2]  }
   0x2   :  { %s16_s10 = sshll.u32 %s2385_s9, 4  ;;  %s17_s10 = int_to_ptr.vmem [resolvable:$true] %s16_s10 }
   0x3   :  { %s2349_s11 = scalar_lea.vmem %s17_s10, 3840  ;;  %p2354_p1 = scmp.lt.s32.totalorder %s17_s10, %s17_s10 }
   0x4   :  { %p2350_p0 = scmp.ne.s32.totalorder %s17_s10, %s2349_s11  ;;  %p2355_p2 = scmp.lt.s32.totalorder %s2349_s11, %s2349_s11 }
   0x6   :  { %p2356_p3 = por %p2355_p2, %p2354_p1 }
   0x8   :  { %p2357_p4 = pnand %p2356_p3, %p2350_p0 }
   0xa   :  { %2360 = shalt.err (!%p2357_p4)
}
   0xb   :  { %s2386_s12 = smov 128   ;;  %s2387_s13 = smov 8  }
   0xc   :  { %22 = dma.hbm_to_vmem [thread:$0]  %s2814_s1, 3840, %s17_s10, [#allocation3], %s2386_s12, %s2386_s12, %s2387_s13  }
   0xd   :  { %2381 = dma.done.wait [#allocation3], 3840  }
   0xe   :  { %2382 = vsyncadd [#allocation3], 4294963456  ;;  %vm62_vm0 = vcmask 261120   ;;  %v2414_v0 = vld [vmem:[#allocation2 + $0x38] sm:$0xff]  ;;  %v2416_v1 = vld [vmem:[#allocation2 + $0x28] sm:$0xff]  ;;  %s2388_s16 = smov 96  }
   0xf   :  { %56 = vrot.lane.b32.xlu0 %v2414_v0, %s2388_s16  ;;  %52 = vrot.lane.b32.xlu1 %v2416_v1, %s2388_s16  ;;  %v2425_v2 = vld [vmem:[%s2813_s0 + $0x20] sm:$0xff]  ;;  %v2427_v3 = vld [vmem:[#allocation2 + $0x30] sm:$0xff]  ;;  %s2389_s1 = smov 32   ;;  %v2441_v10 = vld [vmem:[%s2813_s0 + $0x28] sm:$0xff]  ;;  %vm550_vm1 = vcmask 130048   ;;  %s2390_s5 = smov 64  }
  0x10   :  { %v2429_v4 = vld [vmem:[#allocation2 + $0x20] sm:$0xff]  ;;  %2082 = vmatprep.mubr.msk.f32.mxu1 %vm62_vm0, %v2425_v2  ;;  %v2443_v11 = vld [vmem:[#allocation2 + $0x18] sm:$0xff]  ;;  %v2448_v12 = vld [vmem:[%s2813_s0 + $0x30] sm:$0xff]  ;;  %vm1751_vm2 = vcmask 523264  }
  0x11   :  { %v1909_v5 = vld [vmem:[#allocation2 + $0xe2] ss:$0 sm:$0xff]  ;;  %v2458_v14 = vld [vmem:[%s2813_s0 + $0x10] sm:$0xff]  ;;  %v2468_v16 = vld [vmem:[%s2813_s0 + $0x38] sm:$0xff] }
  0x12   :  { %v2453_v13 = vld [vmem:[%s2813_s0] sm:$0xff]  ;;  %v2460_v15 = vld [vmem:[#allocation2 + $0x10] sm:$0xff]  ;;  %v2473_v17 = vld [vmem:[#allocation2 + $0x8] sm:$0xff] }
  0x13   :  { %54 = vrot.lane.b32.xlu0 %v2427_v3, %s2388_s16  ;;  %50 = vrot.lane.b32.xlu1 %v2429_v4, %s2388_s16  ;;  %v214_v18 = vadd.f32 %v2458_v14, %v2453_v13  ;;  %v2480_v19 = vld [vmem:[%s2813_s0 + $0x8] sm:$0xff]  ;;  %v2485_v20 = vld [vmem:[%s2813_s0 + $0x18] sm:$0xff]  ;;  %v2489_v21 = vld [vmem:[#allocation2] sm:$0xff] }
  0x14   :  { %v215_v22 = vadd.f32 %v2485_v20, %v2480_v19  ;;  %v1908_v28 = vld [vmem:[#allocation2 + $0xe1] ss:$0 sm:$0xff]  ;;  %v2521_v37 = vld [vmem:[#allocation2 + $0x48] sm:$0xff]  ;;  %v2525_v38 = vld [vmem:[#allocation2 + $0x50] sm:$0xff] }
  0x15   :  { %v2513_v33 = vld [vmem:[#allocation2 + $0x40] sm:$0xff]  ;;  %v2529_v39 = vld [vmem:[#allocation2 + $0x58] sm:$0xff]  ;;  %v2537_v41 = vld [vmem:[#allocation2 + $0x68] sm:$0xff] }
  0x16   :  { %v2533_v40 = vld [vmem:[#allocation2 + $0x60] sm:$0xff]  ;;  %v2541_v42 = vld [vmem:[#allocation2 + $0x70] sm:$0xff]  ;;  %v2545_v43 = vld [vmem:[#allocation2 + $0x78] sm:$0xff] }
  0x17   :  { %330 = vrot.lane.b32.xlu0 %v1909_v5, %s2389_s1 }
  0x81   :  { %v57_v6 = vpop.permute.xlu0 %56  ;;  %v53_v7 = vpop.permute.xlu1 %52 }
  0x82   :  { %2068 = vmatprep.subr.mxu0 %v57_v6  ;;  %2237 = vmatprep.subr.mxu1 %v57_v6 }
  0x83   :  { %2069 = vmatpush3.msra.mxu0 %v57_v6  ;;  %2241 = vmatpush3.msra.mxu1 %v57_v6 }
  0x85   :  { %v55_v8 = vpop.permute.xlu0 %54  ;;  %v51_v9 = vpop.permute.xlu1 %50 }
  0x86   :  { %2070 = vmatprep.subr.mxu0 %v55_v8  ;;  %2238 = vmatprep.subr.mxu1 %v55_v8 }
  0x87   :  { %2071 = vmatpush3.msra.mxu0 %v55_v8  ;;  %2242 = vmatpush3.msra.mxu1 %v55_v8 }
  0x88   :  { %2072 = vmatprep.subr.mxu0 %v53_v7  ;;  %2239 = vmatprep.subr.mxu1 %v53_v7 }
  0x89   :  { %2073 = vmatpush3.msra.mxu0 %v53_v7  ;;  %2243 = vmatpush3.msra.mxu1 %v53_v7  ;;  %v331_v27 = vpop.permute.xlu0 %330 }
  0x8a   :  { %2074 = vmatprep.subr.mxu0 %v51_v9  ;;  %2240 = vmatprep.subr.mxu1 %v51_v9 }
  0x8b   :  { %2075 = vmatpush3.msra.mxu0 %v51_v9  ;;  %2244 = vmatpush3.msra.mxu1 %v51_v9 }
  0x8c   :  { %2083 = vmatmul.mubr.msk.f32.vlgmr.msra.gmra.mxu1 %vm62_vm0, %v2441_v10  ;;  %2088 = vmatprep.subr.mxu1 %v2443_v11 }
  0x8d   :  { %2089 = vmatpush3.msra.mxu1 %v2443_v11  ;;  %2085 = vmatprep.mubr.msk.f32.mxu1 %vm62_vm0, %v2448_v12 }
  0x8e   :  { %2090 = vmatprep.subr.mxu1 %v2460_v15 }
  0x8f   :  { %2091 = vmatpush3.msra.mxu1 %v2460_v15 }
  0x90   :  { %2086 = vmatmul.mubr.msk.f32.gmra.mxu1 %vm62_vm0, %v2468_v16  ;;  %2092 = vmatprep.subr.mxu1 %v2473_v17 }
  0x91   :  { %2093 = vmatpush3.msra.mxu1 %v2473_v17  ;;  %2096 = vmatprep.mubr.msk.f32.mxu1 %vm62_vm0, %v214_v18 }
  0x92   :  { %2094 = vmatprep.subr.mxu1 %v2489_v21 }
  0x93   :  { %2095 = vmatpush3.msra.mxu1 %v2489_v21 }
  0x94   :  { %2097 = vmatmul.mubr.msk.f32.vlgmr.msra.gmra.mxu1 %vm62_vm0, %v215_v22 }
  0x95   :  { %2099 = vmatprep.mubr.msk.f32.mxu1 %vm62_vm0, %v2453_v13 }
  0x98   :  { %2100 = vmatmul.mubr.msk.f32.gmra.mxu1 %vm62_vm0, %v2480_v19 }
 0x14c   :  { %v2505_v23 = vpop.f32.mrf.mxu1 }
 0x14e   :  { %v2507_v24 = vpop.f32.mrf.mxu1 }
 0x150   :  { %v2509_v25 = vpop.f32.mrf.mxu1 }
 0x152   :  { %v2511_v26 = vpop.f32.mrf.mxu1 }
 0x154   :  { %v2098_v29 = vpop.f32.mrf.mxu1 }
 0x155   :  { %v323_v30 = vadd.f32 %v2098_v29, %v1908_v28  ;;  %v334_v31 = vadd.f32 %v2098_v29, %v331_v27 }
 0x156   :  { %v298_v32 = vpop.f32.mrf.mxu1 }
 0x157   :  { %v322_v34 = vadd.f32 %v1908_v28, %v298_v32  ;;  %v333_v35 = vadd.f32 %v331_v27, %v298_v32  ;;  %367 = vrot.lane.b32.xlu1 %v334_v31, %s2388_s16  ;;  %v356_v46 = vmul.f32 %v2521_v37, %v323_v30  ;;  %v358_v48 = vmul.f32 %v2529_v39, %v323_v30 }
 0x158   :  { %v360_v50 = vmul.f32 %v2537_v41, %v323_v30  ;;  %v362_v52 = vmul.f32 %v2545_v43, %v323_v30  ;;  %v2567_v53 = vpop.f32.mrf.mxu1 }
 0x159   :  { %365 = vrot.lane.b32.xlu0 %v333_v35, %s2388_s16  ;;  %v355_v36 = vmul.f32 %v2513_v33, %v322_v34  ;;  %v357_v47 = vmul.f32 %v2525_v38, %v322_v34  ;;  %v359_v49 = vmul.f32 %v2533_v40, %v322_v34  ;;  %v361_v51 = vmul.f32 %v2541_v42, %v322_v34 }
 0x15a   :  { %v2569_v56 = vpop.f32.mrf.mxu1 }
 0x15b   :  { %2106 = vmatprep.mubr.msk.f32.mxu1 %vm62_vm0, %v355_v36  ;;  %518 = vrot.lane.b32.xlu1 %v2513_v33, %s2388_s16 }
 0x15d   :  { %520 = vrot.lane.b32.xlu0 %v2521_v37, %s2388_s16 }
 0x15f   :  { %522 = vrot.lane.b32.xlu1 %v2525_v38, %s2388_s16 }
 0x161   :  { %524 = vrot.lane.b32.xlu0 %v2529_v39, %s2388_s16 }
 0x163   :  { %526 = vrot.lane.b32.xlu1 %v2533_v40, %s2388_s16 }
 0x165   :  { %528 = vrot.lane.b32.xlu0 %v2537_v41, %s2388_s16 }
 0x167   :  { %530 = vrot.lane.b32.xlu1 %v2541_v42, %s2388_s16 }
 0x169   :  { %532 = vrot.lane.b32.xlu0 %v2545_v43, %s2388_s16 }
 0x1c9   :  { %v368_v44 = vpop.permute.xlu1 %367 }
 0x1ca   :  { %2102 = vmatprep.subr.msk.mxu1 %vm62_vm0, %v368_v44 }
 0x1cb   :  { %2103 = vmatpush3.xpose.msk.msra.mxu1 %vm62_vm0, %v368_v44  ;;  %v366_v45 = vpop.permute.xlu0 %365 }
 0x1cc   :  { %2104 = vmatprep.subr.msk.mxu1 %vm62_vm0, %v366_v45 }
 0x1cd   :  { %v519_v55 = vpop.permute.xlu1 %518 }
 0x1cf   :  { %2105 = vmatpush3.xpose.msk.msra.mxu1 %vm62_vm0, %v366_v45  ;;  %v521_v54 = vpop.permute.xlu0 %520 }
 0x1d1   :  { %v523_v61 = vpop.permute.xlu1 %522 }
 0x1d2   :  { %2107 = vmatmul.mubr.msk.f32.vlgmr.msra.gmra.mxu1 %vm62_vm0, %v356_v46 }
 0x1d3   :  { %2109 = vmatprep.mubr.msk.f32.mxu1 %vm62_vm0, %v357_v47  ;;  %v525_v58 = vpop.permute.xlu0 %524 }
 0x1d5   :  { %v527_v30 = vpop.permute.xlu1 %526 }
 0x1d6   :  { %2110 = vmatmul.mubr.msk.f32.gmra.mxu1 %vm62_vm0, %v358_v48 }
 0x1d7   :  { %2112 = vmatprep.mubr.msk.f32.mxu1 %vm62_vm0, %v359_v49  ;;  %v529_v18 = vpop.permute.xlu0 %528 }
 0x1da   :  { %2113 = vmatmul.mubr.msk.f32.gmra.mxu1 %vm62_vm0, %v360_v50 }
 0x1db   :  { %2115 = vmatprep.mubr.msk.f32.mxu1 %vm62_vm0, %v361_v51  ;;  %v533_v47 = vpop.permute.xlu0 %532  ;;  %v531_v51 = vpop.permute.xlu1 %530 }
 0x1de   :  { %2116 = vmatmul.mubr.msk.f32.gmra.mxu1 %vm62_vm0, %v362_v52 }
 0x292   :  { %v2108_v57 = vpop.f32.mrf.mxu1 }
 0x293   :  { %v503_v59 = vmul.f32 0.35355338, %v2108_v57 }
 0x294   :  { %v463_v60 = vpop.f32.mrf.mxu1 }
 0x295   :  { %v543_v62 = vadd.f32 %v521_v54, %v503_v59  ;;  %v502_v63 = vmul.f32 0.35355338, %v463_v60 }
 0x296   :  { %v2111_v5 = vpop.f32.mrf.mxu1 }
 0x297   :  { %v542_v6 = vadd.f32 %v519_v55, %v502_v63  ;;  %v505_v7 = vmul.f32 0.35355338, %v2111_v5  ;;  %v554_v8 = vsel %vm550_vm1, %v543_v62, -inf }
 0x298   :  { %555 = vmax.xlane.f32.xlu0 %v554_v8  ;;  %v473_v9 = vpop.f32.mrf.mxu1 }
 0x299   :  { %v545_v22 = vadd.f32 %v525_v58, %v505_v7  ;;  %v504_v27 = vmul.f32 0.35355338, %v473_v9  ;;  %v551_v28 = vsel %vm550_vm1, %v542_v6, -inf }
 0x29a   :  { %552 = vmax.xlane.f32.xlu1 %v551_v28  ;;  %v2114_v29 = vpop.f32.mrf.mxu1 }
 0x29b   :  { %v544_v31 = vadd.f32 %v523_v61, %v504_v27  ;;  %v507_v32 = vmul.f32 0.35355338, %v2114_v29  ;;  %v560_v44 = vsel %vm550_vm1, %v545_v22, -inf  ;;  %v1910_v61 = vld [vmem:[#allocation2 + $0xe3] ss:$0 sm:$0xff] }
 0x29c   :  { %v483_v34 = vpop.f32.mrf.mxu1 }
 0x29d   :  { %v547_v35 = vadd.f32 %v529_v18, %v507_v32  ;;  %v506_v36 = vmul.f32 0.35355338, %v483_v34  ;;  %v557_v45 = vsel %vm550_vm1, %v544_v31, -inf }
 0x29e   :  { %561 = vmax.xlane.f32.xlu1 %v560_v44  ;;  %558 = vmax.xlane.f32.xlu0 %v557_v45  ;;  %v2117_v46 = vpop.f32.mrf.mxu1 }
 0x29f   :  { %v546_v48 = vadd.f32 %v527_v30, %v506_v36  ;;  %v509_v49 = vmul.f32 0.35355338, %v2117_v46  ;;  %v566_v55 = vsel %vm550_vm1, %v547_v35, -inf }
 0x2a0   :  { %v493_v50 = vpop.f32.mrf.mxu1 }
 0x2a1   :  { %v549_v52 = vadd.f32 %v533_v47, %v509_v49  ;;  %v508_v54 = vmul.f32 0.35355338, %v493_v50  ;;  %v563_v57 = vsel %vm550_vm1, %v546_v48, -inf }
 0x2a2   :  { %567 = vmax.xlane.f32.xlu1 %v566_v55  ;;  %564 = vmax.xlane.f32.xlu0 %v563_v57 }
 0x2a3   :  { %v548_v58 = vadd.f32 %v531_v51, %v508_v54  ;;  %v572_v59 = vsel %vm550_vm1, %v549_v52, -inf }
 0x2a5   :  { %v569_v60 = vsel %vm550_vm1, %v548_v58, -inf }
 0x2a6   :  { %573 = vmax.xlane.f32.xlu1 %v572_v59  ;;  %570 = vmax.xlane.f32.xlu0 %v569_v60 }
 0x2bc   :  { %341 = vrot.lane.b32.xlu0 %v1910_v61, %s2390_s5 }
 0x321   :  { %v556_v63 = vpop.xlane.xlu0 %555 }
 0x322   :  { %v576_v5 = vsub.f32 %v543_v62, %v556_v63 }
 0x323   :  { %v553_v7 = vpop.xlane.xlu1 %552 }
 0x324   :  { %v585_v8 = vmul.f32 1.442695, %v576_v5  ;;  %v575_v9 = vsub.f32 %v542_v6, %v553_v7 }
 0x326   :  { %2253 = vpow2.f32 %v585_v8  ;;  %v583_v18 = vmul.f32 1.442695, %v575_v9 }
 0x327   :  { %v562_v27 = vpop.xlane.xlu1 %561  ;;  %v559_v28 = vpop.xlane.xlu0 %558 }
 0x328   :  { %2255 = vpow2.f32 %v583_v18  ;;  %v578_v29 = vsub.f32 %v545_v22, %v562_v27  ;;  %v577_v30 = vsub.f32 %v544_v31, %v559_v28  ;;  %v35_v27 = vld [vmem:[%s2813_s0 + $0x48] sm:$0xff]  ;;  %v36_v28 = vld [vmem:[%s2813_s0 + $0x50] sm:$0xff] }
 0x32a   :  { %v589_v32 = vmul.f32 1.442695, %v578_v29  ;;  %v587_v44 = vmul.f32 1.442695, %v577_v30  ;;  %v39_v29 = vadd.f32 %v35_v27, %v2441_v10  ;;  %v34_v30 = vld [vmem:[%s2813_s0 + $0x40] sm:$0xff] }
 0x32b   :  { %v568_v34 = vpop.xlane.xlu1 %567  ;;  %v565_v36 = vpop.xlane.xlu0 %564 }
 0x32c   :  { %2257 = vpow2.f32 %v589_v32  ;;  %v580_v45 = vsub.f32 %v547_v35, %v568_v34  ;;  %v579_v62 = vsub.f32 %v546_v48, %v565_v36  ;;  %v40_v32 = vadd.f32 %v36_v28, %v2448_v12  ;;  %v37_v34 = vld [vmem:[%s2813_s0 + $0x58] sm:$0xff]  ;;  %s2391_s0 = smov 80  }
 0x32d   :  { %2259 = vpow2.f32 %v587_v44  ;;  %v38_v36 = vadd.f32 %v34_v30, %v2425_v2  ;;  %v41_v44 = vadd.f32 %v37_v34, %v2468_v16 }
 0x32e   :  { %v593_v47 = vmul.f32 1.442695, %v580_v45  ;;  %v591_v54 = vmul.f32 1.442695, %v579_v62 }
 0x32f   :  { %v571_v46 = vpop.xlane.xlu0 %570  ;;  %v574_v50 = vpop.xlane.xlu1 %573  ;;  %2076 = vmatprep.mubr.msk.f32.mxu0 %vm62_vm0, %v38_v36 }
 0x330   :  { %v581_v49 = vsub.f32 %v548_v58, %v571_v46  ;;  %2261 = vpow2.f32 %v593_v47  ;;  %v582_v55 = vsub.f32 %v549_v52, %v574_v50  ;;  %2077 = vmatmul.mubr.msk.f32.vlgmr.msra.gmra.mxu0 %vm62_vm0, %v39_v29 }
 0x331   :  { %2079 = vmatprep.mubr.msk.f32.mxu0 %vm62_vm0, %v40_v32 }
 0x332   :  { %v595_v6 = vmul.f32 1.442695, %v581_v49  ;;  %v597_v35 = vmul.f32 1.442695, %v582_v55 }
 0x333   :  { %v2580_v51 = vpop.eup %2253  ;;  %v342_v10 = vpop.permute.xlu0 %341 }
 0x334   :  { %v602_v22 = vsel %vm550_vm1, %v2580_v51, 0.0  ;;  %2263 = vpow2.f32 %v595_v6  ;;  %2080 = vmatmul.mubr.msk.f32.gmra.mxu0 %vm62_vm0, %v41_v44  ;;  %v345_v12 = vadd.f32 %v2567_v53, %v342_v10  ;;  %v344_v2 = vadd.f32 %v342_v10, %v2569_v56 }
 0x335   :  { %v2584_v31 = vpop.eup %2255  ;;  %603 = vadd.xlane.f32.xlu1 %v602_v22  ;;  %2265 = vpow2.f32 %v591_v54 }
 0x336   :  { %v599_v48 = vsel %vm550_vm1, %v2584_v31, 0.0  ;;  %2267 = vpow2.f32 %v597_v35 }
 0x339   :  { %v2588_v57 = vpop.eup %2257  ;;  %600 = vadd.xlane.f32.xlu1 %v599_v48 }
 0x33a   :  { %v608_v58 = vsel %vm550_vm1, %v2588_v57, 0.0  ;;  %v2592_v52 = vpop.eup %2259 }
 0x33b   :  { %v605_v59 = vsel %vm550_vm1, %v2592_v52, 0.0 }
 0x33d   :  { %609 = vadd.xlane.f32.xlu1 %v608_v58  ;;  %v2596_v60 = vpop.eup %2261 }
 0x33e   :  { %v614_v5 = vsel %vm550_vm1, %v2596_v60, 0.0 }
 0x341   :  { %606 = vadd.xlane.f32.xlu1 %v605_v59  ;;  %v2598_v61 = vpop.eup %2263 }
 0x342   :  { %v617_v63 = vsel %vm550_vm1, %v2598_v61, 0.0  ;;  %v2604_v7 = vpop.eup %2265 }
 0x343   :  { %618 = vadd.xlane.f32.xlu0 %v617_v63  ;;  %v611_v8 = vsel %vm550_vm1, %v2604_v7, 0.0  ;;  %v2608_v9 = vpop.eup %2267 }
 0x344   :  { %v620_v18 = vsel %vm550_vm1, %v2608_v9, 0.0 }
 0x345   :  { %615 = vadd.xlane.f32.xlu1 %v614_v5 }
 0x349   :  { %612 = vadd.xlane.f32.xlu1 %v611_v8 }
 0x34d   :  { %621 = vadd.xlane.f32.xlu1 %v620_v18 }
 0x359   :  { %826 = vrot.lane.b32.xlu0 %v2460_v15, %s2389_s1 }
 0x35e   :  { %667 = vrot.lane.b32.xlu1 %v345_v12, %s2390_s5 }
 0x362   :  { %665 = vrot.lane.b32.xlu1 %v344_v2, %s2390_s5 }
 0x366   :  { %828 = vrot.lane.b32.xlu1 %v2443_v11, %s2389_s1 }
 0x36a   :  { %824 = vrot.lane.b32.xlu1 %v2473_v17, %s2389_s1 }
 0x36e   :  { %822 = vrot.lane.b32.xlu1 %v2489_v21, %s2389_s1 }
 0x3be   :  { %v604_v16 = vpop.xlane.xlu1 %603 }
 0x3bf   :  { %2269 = vrcp.f32 %v604_v16 }
 0x3c2   :  { %v601_v15 = vpop.xlane.xlu1 %600 }
 0x3c3   :  { %2271 = vrcp.f32 %v601_v15 }
 0x3c6   :  { %v610_v53 = vpop.xlane.xlu1 %609 }
 0x3c7   :  { %2273 = vrcp.f32 %v610_v53 }
 0x3ca   :  { %v607_v45 = vpop.xlane.xlu1 %606 }
 0x3cb   :  { %2275 = vrcp.f32 %v607_v45 }
 0x3cc   :  { %v619_v56 = vpop.xlane.xlu0 %618  ;;  %v2270_v47 = vpop.eup %2269 }
 0x3cd   :  { %2277 = vrcp.f32 %v619_v56  ;;  %v632_v17 = vmul.f32 %v2270_v47, %v604_v16 }
 0x3ce   :  { %v616_v46 = vpop.xlane.xlu1 %615 }
 0x3cf   :  { %2279 = vrcp.f32 %v616_v46  ;;  %v640_v55 = vsub.f32 2.0, %v632_v17 }
 0x3d0   :  { %v2272_v11 = vpop.eup %2271 }
 0x3d1   :  { %v631_v62 = vmul.f32 %v2272_v11, %v601_v15  ;;  %v648_v5 = vmul.f32 %v2270_v47, %v640_v55  ;;  %v827_v15 = vpop.permute.xlu0 %826 }
 0x3d2   :  { %v613_v49 = vpop.xlane.xlu1 %612 }
 0x3d3   :  { %v639_v50 = vsub.f32 2.0, %v631_v62  ;;  %2281 = vrcp.f32 %v613_v49 }
 0x3d4   :  { %v2274_v21 = vpop.eup %2273 }
 0x3d5   :  { %v647_v6 = vmul.f32 %v2272_v11, %v639_v50  ;;  %v634_v35 = vmul.f32 %v2274_v21, %v610_v53 }
 0x3d6   :  { %v622_v54 = vpop.xlane.xlu1 %621 }
 0x3d7   :  { %v655_v22 = vmul.f32 %v2584_v31, %v647_v6  ;;  %2283 = vrcp.f32 %v622_v54  ;;  %v642_v8 = vsub.f32 2.0, %v634_v35  ;;  %v656_v31 = vmul.f32 %v2580_v51, %v648_v5 }
 0x3d8   :  { %v2276_v48 = vpop.eup %2275 }
 0x3d9   :  { %v633_v58 = vmul.f32 %v2276_v48, %v607_v45  ;;  %2122 = vmatprep.mubr.msk.f32.mxu0 %vm550_vm1, %v655_v22  ;;  %v650_v34 = vmul.f32 %v2274_v21, %v642_v8 }
 0x3da   :  { %v668_v59 = vpop.permute.xlu1 %667  ;;  %v2278_v63 = vpop.eup %2277 }
 0x3db   :  { %v641_v18 = vsub.f32 2.0, %v633_v58  ;;  %2118 = vmatprep.subr.mxu0 %v668_v59  ;;  %v637_v29 = vmul.f32 %v2278_v63, %v619_v56  ;;  %v658_v51 = vmul.f32 %v2588_v57, %v650_v34 }
 0x3dc   :  { %v2280_v27 = vpop.eup %2279  ;;  %2119 = vmatpush3.msra.mxu0 %v668_v59 }
 0x3dd   :  { %v649_v28 = vmul.f32 %v2276_v48, %v641_v18  ;;  %v636_v30 = vmul.f32 %v2280_v27, %v616_v46  ;;  %v645_v12 = vsub.f32 2.0, %v637_v29 }
 0x3de   :  { %v666_v32 = vpop.permute.xlu1 %665 }
 0x3df   :  { %v657_v36 = vmul.f32 %v2592_v52, %v649_v28  ;;  %2120 = vmatprep.subr.mxu0 %v666_v32  ;;  %v644_v10 = vsub.f32 2.0, %v636_v30  ;;  %v653_v56 = vmul.f32 %v2278_v63, %v645_v12 }
 0x3e0   :  { %v2282_v44 = vpop.eup %2281  ;;  %2121 = vmatpush3.msra.mxu0 %v666_v32 }
 0x3e1   :  { %v635_v2 = vmul.f32 %v2282_v44, %v613_v49  ;;  %2123 = vmatmul.mubr.msk.f32.vlgmr.msra.gmra.mxu0 %vm550_vm1, %v656_v31  ;;  %2145 = vmatprep.subr.mxu0 %v2414_v0  ;;  %v652_v45 = vmul.f32 %v2280_v27, %v644_v10 }
 0x3e2   :  { %2125 = vmatprep.mubr.msk.f32.mxu0 %vm550_vm1, %v657_v36  ;;  %v829_v16 = vpop.permute.xlu1 %828  ;;  %2146 = vmatpush3.msra.mxu0 %v2414_v0 }
 0x3e3   :  { %v643_v53 = vsub.f32 2.0, %v635_v2  ;;  %2134 = vmatprep.subr.mxu1 %v829_v16  ;;  %2147 = vmatprep.subr.mxu0 %v2427_v3  ;;  %v660_v62 = vmul.f32 %v2596_v60, %v652_v45 }
 0x3e4   :  { %v2284_v52 = vpop.eup %2283  ;;  %2135 = vmatpush3.msra.mxu1 %v829_v16  ;;  %2148 = vmatpush3.msra.mxu0 %v2427_v3  ;;  %v661_v3 = vmul.f32 %v2598_v61, %v653_v56  ;;  %v1929_v16 = vld [vmem:[#allocation2 + $0xe4] ss:$0 sm:$0xff] }
 0x3e5   :  { %v651_v46 = vmul.f32 %v2282_v44, %v643_v53  ;;  %v638_v47 = vmul.f32 %v2284_v52, %v622_v54  ;;  %2126 = vmatmul.mubr.msk.f32.gmra.mxu0 %vm550_vm1, %v658_v51  ;;  %2136 = vmatprep.subr.mxu1 %v827_v15 }
 0x3e6   :  { %v825_v11 = vpop.permute.xlu1 %824  ;;  %2137 = vmatpush3.msra.mxu1 %v827_v15  ;;  %2149 = vmatprep.subr.mxu0 %v2416_v1 }
 0x3e7   :  { %v659_v0 = vmul.f32 %v2604_v7, %v651_v46  ;;  %v646_v57 = vsub.f32 2.0, %v638_v47  ;;  %2138 = vmatprep.subr.mxu1 %v825_v11  ;;  %2150 = vmatpush3.msra.mxu0 %v2416_v1  ;;  %v1902_v1 = vld [vmem:[#allocation2 + $0xe6] ss:$0 sm:$0xff] }
 0x3e8   :  { %2139 = vmatpush3.msra.mxu1 %v825_v11  ;;  %2151 = vmatprep.subr.mxu0 %v2429_v4 }
 0x3e9   :  { %v654_v49 = vmul.f32 %v2284_v52, %v646_v57  ;;  %2128 = vmatprep.mubr.msk.f32.mxu0 %vm550_vm1, %v659_v0  ;;  %2152 = vmatpush3.msra.mxu0 %v2429_v4 }
 0x3ea   :  { %2129 = vmatmul.mubr.msk.f32.gmra.mxu0 %vm550_vm1, %v660_v62  ;;  %v823_v17 = vpop.permute.xlu1 %822 }
 0x3eb   :  { %v662_v7 = vmul.f32 %v2608_v9, %v654_v49  ;;  %2131 = vmatprep.mubr.msk.f32.mxu0 %vm550_vm1, %v661_v3  ;;  %2140 = vmatprep.subr.mxu1 %v823_v17 }
 0x3ec   :  { %2141 = vmatpush3.msra.mxu1 %v823_v17 }
 0x3ee   :  { %2132 = vmatmul.mubr.msk.f32.gmra.mxu0 %vm550_vm1, %v662_v7 }
 0x3f0   :  { %v2078_v60 = vpop.f32.mrf.mxu0 }
 0x3f1   :  { %v198_v50 = vadd.f32 %v2078_v60, %v1902_v1 }
 0x3f2   :  { %v153_v61 = vpop.f32.mrf.mxu0 }
 0x3f3   :  { %v197_v21 = vadd.f32 %v1902_v1, %v153_v61 }
 0x3f4   :  { %v2081_v6 = vpop.f32.mrf.mxu0 }
 0x3f5   :  { %v200_v54 = vadd.f32 %v2081_v6, %v1902_v1 }
 0x3f6   :  { %v163_v4 = vpop.f32.mrf.mxu0 }
 0x3f7   :  { %2156 = vmatprep.subr.msk.mxu1 %vm62_vm0, %v200_v54  ;;  %v199_v2 = vadd.f32 %v1902_v1, %v163_v4  ;;  %v1932_v4 = vld [vmem:[#allocation2 + $0xea] ss:$0 sm:$0xff] }
 0x4a1   :  { %v2124_v55 = vpop.f32.mrf.mxu0 }
 0x4a2   :  { %v801_v18 = vmul.f32 %v2124_v55, %v2521_v37 }
 0x4a3   :  { %v761_v22 = vpop.f32.mrf.mxu0 }
 0x4a4   :  { %v800_v5 = vmul.f32 %v761_v22, %v2513_v33  ;;  %v1933_v22 = vld [vmem:[#allocation2 + $0xeb] ss:$0 sm:$0xff] }
 0x4a5   :  { %v2127_v35 = vpop.f32.mrf.mxu0 }
 0x4a6   :  { %v803_v59 = vmul.f32 %v2127_v35, %v2529_v39 }
 0x4a7   :  { %v771_v9 = vpop.f32.mrf.mxu0 }
 0x4a8   :  { %v802_v58 = vmul.f32 %v771_v9, %v2525_v38  ;;  %v809_v30 = vadd.f32 %v803_v59, %v801_v18 }
 0x4aa   :  { %v2130_v48 = vpop.f32.mrf.mxu0  ;;  %v808_v29 = vadd.f32 %v802_v58, %v800_v5 }
 0x4ab   :  { %v805_v27 = vmul.f32 %v2130_v48, %v2537_v41 }
 0x4ac   :  { %v781_v63 = vpop.f32.mrf.mxu0 }
 0x4ad   :  { %v804_v8 = vmul.f32 %v781_v63, %v2533_v40  ;;  %v811_v44 = vadd.f32 %v809_v30, %v805_v27 }
 0x4ae   :  { %v2133_v28 = vpop.f32.mrf.mxu0 }
 0x4af   :  { %v807_v32 = vmul.f32 %v2133_v28, %v2545_v43  ;;  %v810_v34 = vadd.f32 %v808_v29, %v804_v8 }
 0x4b0   :  { %v791_v31 = vpop.f32.mrf.mxu0 }
 0x4b1   :  { %v806_v36 = vmul.f32 %v791_v31, %v2541_v42  ;;  %v813_v12 = vadd.f32 %v811_v44, %v807_v32 }
 0x4b3   :  { %v812_v10 = vadd.f32 %v810_v34, %v806_v36 }
 0x4b5   :  { %2142 = vmatprep.mubr.msk.f32.mxu1 %vm62_vm0, %v812_v10 }
 0x4b6   :  { %2143 = vmatmul.mubr.msk.f32.vlgmr.msra.gmra.mxu1 %vm62_vm0, %v813_v12 }
 0x4b7   :  { %2157 = vmatpush3.xpose.msk.msra.mxu1 %vm62_vm0, %v200_v54 }
 0x4b8   :  { %2158 = vmatprep.subr.msk.mxu1 %vm62_vm0, %v199_v2 }
 0x4bb   :  { %2159 = vmatpush3.xpose.msk.msra.mxu1 %vm62_vm0, %v199_v2 }
 0x4bc   :  { %2160 = vmatprep.subr.msk.mxu1 %vm62_vm0, %v198_v50 }
 0x4bf   :  { %2161 = vmatpush3.xpose.msk.msra.mxu1 %vm62_vm0, %v198_v50 }
 0x4c0   :  { %2162 = vmatprep.subr.msk.mxu1 %vm62_vm0, %v197_v21 }
 0x4c3   :  { %2163 = vmatpush3.xpose.msk.msra.mxu1 %vm62_vm0, %v197_v21 }
 0x576   :  { %v2144_v15 = vpop.f32.mrf.mxu1 }
 0x577   :  { %v912_v51 = vadd.f32 %v2144_v15, %v1929_v16 }
 0x578   :  { %v906_v53 = vpop.f32.mrf.mxu1 }
 0x579   :  { %v907_v52 = vadd.f32 %v1929_v16, %v906_v53  ;;  %v916_v45 = vadd.f32 %v912_v51, %v2480_v19 }
 0x57b   :  { %v922_v56 = vsel %vm62_vm0, %v916_v45, 0.0  ;;  %v915_v46 = vadd.f32 %v907_v52, %v2453_v13 }
 0x57c   :  { %923 = vadd.xlane.f32.xlu0 %v922_v56 }
 0x57d   :  { %v919_v47 = vsel %vm62_vm0, %v915_v46, 0.0 }
 0x57e   :  { %920 = vadd.xlane.f32.xlu1 %v919_v47 }
 0x592   :  { %1204 = vrot.lane.b32.xlu0 %v2513_v33, %s2391_s0 }
 0x596   :  { %1212 = vrot.lane.b32.xlu0 %v2533_v40, %s2391_s0 }
 0x59a   :  { %1216 = vrot.lane.b32.xlu0 %v2541_v42, %s2391_s0 }
 0x605   :  { %v924_v11 = vpop.xlane.xlu0 %923 }
 0x606   :  { %v927_v0 = vmul.f32 0.03125, %v924_v11 }
 0x607   :  { %v921_v57 = vpop.xlane.xlu1 %920 }
 0x608   :  { %v926_v62 = vmul.f32 0.03125, %v921_v57  ;;  %v929_v3 = vsub.f32 %v916_v45, %v927_v0 }
 0x609   :  { %v1205_v2 = vpop.permute.xlu0 %1204 }
 0x60a   :  { %v928_v49 = vsub.f32 %v915_v46, %v926_v62  ;;  %v931_v1 = vmul.f32 %v929_v3, %v929_v3 }
 0x60c   :  { %v930_v17 = vmul.f32 %v928_v49, %v928_v49  ;;  %v935_v19 = vsel %vm62_vm0, %v931_v1, 0.0 }
 0x60d   :  { %v1213_v57 = vpop.permute.xlu0 %1212 }
 0x60e   :  { %v932_v7 = vsel %vm62_vm0, %v930_v17, 0.0 }
 0x60f   :  { %933 = vadd.xlane.f32.xlu1 %v932_v7 }
 0x613   :  { %936 = vadd.xlane.f32.xlu1 %v935_v19 }
 0x624   :  { %1206 = vrot.lane.b32.xlu1 %v2521_v37, %s2391_s0 }
 0x628   :  { %1208 = vrot.lane.b32.xlu1 %v2525_v38, %s2391_s0 }
 0x62c   :  { %1210 = vrot.lane.b32.xlu1 %v2529_v39, %s2391_s0 }
 0x630   :  { %1214 = vrot.lane.b32.xlu1 %v2537_v41, %s2391_s0 }
 0x634   :  { %1218 = vrot.lane.b32.xlu1 %v2545_v43, %s2391_s0 }
 0x698   :  { %v934_v60 = vpop.xlane.xlu1 %933 }
 0x699   :  { %v938_v13 = vmul.f32 0.03125, %v934_v60 }
 0x69b   :  { %v940_v50 = vadd.f32 1e-05, %v938_v13 }
 0x69c   :  { %v937_v61 = vpop.xlane.xlu1 %936 }
 0x69d   :  { %2285 = vrsqrt.f32 %v940_v50  ;;  %v939_v21 = vmul.f32 0.03125, %v937_v61 }
 0x69f   :  { %v941_v6 = vadd.f32 1e-05, %v939_v21 }
 0x6a0   :  { %v1207_v36 = vpop.permute.xlu1 %1206 }
 0x6a1   :  { %2287 = vrsqrt.f32 %v941_v6 }
 0x6aa   :  { %v2286_v54 = vpop.eup %2285 }
 0x6ab   :  { %v944_v55 = vmul.f32 %v2286_v54, %v928_v49  ;;  %v1217_v54 = vpop.permute.xlu0 %1216 }
 0x6ad   :  { %v950_v35 = vmul.f32 %v1932_v4, %v944_v55 }
 0x6ae   :  { %v2288_v9 = vpop.eup %2287 }
 0x6af   :  { %v945_v48 = vmul.f32 %v2288_v9, %v929_v3  ;;  %v2692_v58 = vadd.f32 %v1933_v22, %v950_v35  ;;  %v1903_v9 = vld [vmem:[#allocation2 + $0xe7] ss:$0 sm:$0xff] }
 0x6b1   :  { %v951_v59 = vmul.f32 %v1932_v4, %v945_v48  ;;  %v958_v63 = vadd.f32 %v2692_v58, %v2458_v14  ;;  %v1934_v14 = vld [vmem:[#allocation2 + $0xe5] ss:$0 sm:$0xff] }
 0x6b3   :  { %v2696_v5 = vadd.f32 %v1933_v22, %v951_v59  ;;  %2153 = vmatprep.mubr.msk.f32.mxu0 %vm62_vm0, %v958_v63 }
 0x6b5   :  { %v959_v8 = vadd.f32 %v2696_v5, %v2485_v20 }
 0x6b7   :  { %2154 = vmatmul.mubr.msk.f32.vlgmr.msra.gmra.mxu0 %vm62_vm0, %v959_v8 }
 0x777   :  { %v2155_v20 = vpop.f32.mrf.mxu0 }
 0x778   :  { %v1043_v18 = vadd.f32 %v2155_v20, %v1934_v14 }
 0x779   :  { %v1037_v27 = vpop.f32.mrf.mxu0 }
 0x77a   :  { %v1038_v28 = vadd.f32 %v1934_v14, %v1037_v27  ;;  %v1048_v30 = vmul.f32 %v1043_v18, %v2521_v37  ;;  %v1050_v31 = vmul.f32 %v1043_v18, %v2529_v39  ;;  %v1209_v39 = vpop.permute.xlu1 %1208 }
 0x77c   :  { %v1047_v29 = vmul.f32 %v1038_v28, %v2513_v33  ;;  %v1049_v32 = vmul.f32 %v1038_v28, %v2525_v38  ;;  %v1051_v34 = vmul.f32 %v1038_v28, %v2533_v40  ;;  %v1052_v33 = vmul.f32 %v1043_v18, %v2537_v41 }
 0x77d   :  { %v1053_v37 = vmul.f32 %v1038_v28, %v2541_v42  ;;  %v1054_v38 = vmul.f32 %v1043_v18, %v2545_v43 }
 0x77e   :  { %2164 = vmatprep.mubr.msk.f32.mxu1 %vm62_vm0, %v1047_v29  ;;  %v1211_v40 = vpop.permute.xlu1 %1210 }
 0x77f   :  { %2165 = vmatmul.mubr.msk.f32.vlgmr.msra.gmra.mxu1 %vm62_vm0, %v1048_v30 }
 0x780   :  { %2167 = vmatprep.mubr.msk.f32.mxu1 %vm62_vm0, %v1049_v32 }
 0x782   :  { %v1215_v45 = vpop.permute.xlu1 %1214 }
 0x783   :  { %2168 = vmatmul.mubr.msk.f32.gmra.mxu1 %vm62_vm0, %v1050_v31 }
 0x784   :  { %2170 = vmatprep.mubr.msk.f32.mxu1 %vm62_vm0, %v1051_v34 }
 0x786   :  { %v1219_v1 = vpop.permute.xlu1 %1218 }
 0x787   :  { %2171 = vmatmul.mubr.msk.f32.gmra.mxu1 %vm62_vm0, %v1052_v33 }
 0x788   :  { %2173 = vmatprep.mubr.msk.f32.mxu1 %vm62_vm0, %v1053_v37 }
 0x78b   :  { %2174 = vmatmul.mubr.msk.f32.gmra.mxu1 %vm62_vm0, %v1054_v38 }
 0x83f   :  { %v2166_v44 = vpop.f32.mrf.mxu1 }
 0x840   :  { %v1197_v10 = vmul.f32 0.35355338, %v2166_v44 }
 0x841   :  { %v1157_v12 = vpop.f32.mrf.mxu1 }
 0x842   :  { %v1196_v16 = vmul.f32 0.35355338, %v1157_v12  ;;  %v1229_v15 = vadd.f32 %v1207_v36, %v1197_v10 }
 0x843   :  { %v2169_v41 = vpop.f32.mrf.mxu1 }
 0x844   :  { %v1228_v51 = vadd.f32 %v1205_v2, %v1196_v16  ;;  %v1199_v42 = vmul.f32 0.35355338, %v2169_v41  ;;  %v1239_v53 = vsel %vm62_vm0, %v1229_v15, -inf }
 0x845   :  { %v1167_v52 = vpop.f32.mrf.mxu1  ;;  %1240 = vmax.xlane.f32.xlu1 %v1239_v53 }
 0x846   :  { %v1198_v43 = vmul.f32 0.35355338, %v1167_v52  ;;  %v1231_v56 = vadd.f32 %v1211_v40, %v1199_v42  ;;  %v1236_v46 = vsel %vm62_vm0, %v1228_v51, -inf }
 0x847   :  { %1237 = vmax.xlane.f32.xlu0 %v1236_v46  ;;  %v2172_v47 = vpop.f32.mrf.mxu1 }
 0x848   :  { %v1201_v11 = vmul.f32 0.35355338, %v2172_v47  ;;  %v1245_v49 = vsel %vm62_vm0, %v1231_v56, -inf  ;;  %v1230_v17 = vadd.f32 %v1209_v39, %v1198_v43 }
 0x849   :  { %v1177_v0 = vpop.f32.mrf.mxu1 }
 0x84a   :  { %v1200_v62 = vmul.f32 0.35355338, %v1177_v0  ;;  %v1233_v3 = vadd.f32 %v1215_v45, %v1201_v11  ;;  %v1242_v6 = vsel %vm62_vm0, %v1230_v17, -inf }
 0x84b   :  { %v2175_v7 = vpop.f32.mrf.mxu1  ;;  %1246 = vmax.xlane.f32.xlu0 %v1245_v49 }
 0x84c   :  { %v1203_v19 = vmul.f32 0.35355338, %v2175_v7  ;;  %v1251_v60 = vsel %vm62_vm0, %v1233_v3, -inf  ;;  %v1232_v50 = vadd.f32 %v1213_v57, %v1200_v62  ;;  %v2330_v7 = vld [vmem:[#allocation2 + $0x30] sm:$0xff] }
 0x84d   :  { %v1187_v13 = vpop.f32.mrf.mxu1  ;;  %1252 = vmax.xlane.f32.xlu1 %v1251_v60 }
 0x84e   :  { %v1202_v61 = vmul.f32 0.35355338, %v1187_v13  ;;  %v1235_v21 = vadd.f32 %v1219_v1, %v1203_v19  ;;  %v1248_v22 = vsel %vm62_vm0, %v1232_v50, -inf  ;;  %v2331_v1 = vld [vmem:[#allocation2 + $0x28] sm:$0xff]  ;;  %v2332_v19 = vld [vmem:[#allocation2 + $0x20] sm:$0xff] }
 0x84f   :  { %1243 = vmax.xlane.f32.xlu0 %v1242_v6 }
 0x850   :  { %v1257_v4 = vsel %vm62_vm0, %v1235_v21, -inf  ;;  %v1234_v55 = vadd.f32 %v1217_v54, %v1202_v61 }
 0x851   :  { %1258 = vmax.xlane.f32.xlu1 %v1257_v4 }
 0x852   :  { %v1254_v35 = vsel %vm62_vm0, %v1234_v55, -inf }
 0x853   :  { %1249 = vmax.xlane.f32.xlu0 %v1248_v22 }
 0x857   :  { %1255 = vmax.xlane.f32.xlu0 %v1254_v35 }
 0x86d   :  { %207 = vrot.lane.b32.xlu0 %v1903_v9, %s2389_s1 }
 0x8ce   :  { %v1241_v32 = vpop.xlane.xlu1 %1240 }
 0x8cf   :  { %v1261_v34 = vsub.f32 %v1229_v15, %v1241_v32 }
 0x8d0   :  { %v1238_v48 = vpop.xlane.xlu0 %1237 }
 0x8d1   :  { %v1270_v33 = vmul.f32 1.442695, %v1261_v34  ;;  %v1260_v37 = vsub.f32 %v1228_v51, %v1238_v48 }
 0x8d3   :  { %v1268_v38 = vmul.f32 1.442695, %v1260_v37 }
 0x8d4   :  { %v1247_v59 = vpop.xlane.xlu0 %1246 }
 0x8d5   :  { %v1263_v36 = vsub.f32 %v1231_v56, %v1247_v59 }
 0x8d6   :  { %v1253_v44 = vpop.xlane.xlu1 %1252 }
 0x8d8   :  { %v1244_v63 = vpop.xlane.xlu0 %1243 }
 0x8d9   :  { %v1262_v39 = vsub.f32 %v1230_v17, %v1244_v63  ;;  %v2329_v17 = vld [vmem:[#allocation2 + $0x38] sm:$0xff] }
 0x8da   :  { %v1259_v15 = vpop.xlane.xlu1 %1258 }
 0x8db   :  { %v1272_v40 = vmul.f32 1.442695, %v1262_v39  ;;  %v1267_v41 = vsub.f32 %v1235_v21, %v1259_v15 }
 0x8dc   :  { %v1250_v8 = vpop.xlane.xlu0 %1249 }
 0x8dd   :  { %v1264_v2 = vsub.f32 %v1232_v50, %v1250_v8  ;;  %v1282_v52 = vmul.f32 1.442695, %v1267_v41 }
 0x8df   :  { %v1276_v51 = vmul.f32 1.442695, %v1264_v2 }
 0x8e0   :  { %v1256_v14 = vpop.xlane.xlu0 %1255 }
 0x8e1   :  { %v1266_v20 = vsub.f32 %v1234_v55, %v1256_v14 }
 0x8e3   :  { %v1280_v18 = vmul.f32 1.442695, %v1266_v20 }
 0x8e4   :  { %v208_v27 = vpop.permute.xlu0 %207 }
 0x8e5   :  { %2289 = vpow2.f32 %v1280_v18  ;;  %v213_v28 = vadd.f32 %v2509_v25, %v208_v27  ;;  %v212_v29 = vadd.f32 %v208_v27, %v2511_v26  ;;  %v1274_v25 = vmul.f32 1.442695, %v1263_v36 }
 0x8e6   :  { %2291 = vpow2.f32 %v1270_v33  ;;  %v1265_v26 = vsub.f32 %v1233_v3, %v1253_v44  ;;  %v210_v10 = vadd.f32 %v208_v27, %v2507_v24  ;;  %v211_v49 = vadd.f32 %v2505_v23, %v208_v27 }
 0x8e7   :  { %1358 = vrot.lane.b32.xlu1 %v213_v28, %s2388_s16  ;;  %2293 = vpow2.f32 %v1268_v38 }
 0x8e8   :  { %2295 = vpow2.f32 %v1274_v25  ;;  %v1278_v12 = vmul.f32 1.442695, %v1265_v26 }
 0x8e9   :  { %2297 = vpow2.f32 %v1272_v40 }
 0x8ea   :  { %2299 = vpow2.f32 %v1278_v12 }
 0x8eb   :  { %1356 = vrot.lane.b32.xlu1 %v212_v29, %s2388_s16  ;;  %2301 = vpow2.f32 %v1276_v51 }
 0x8ec   :  { %2303 = vpow2.f32 %v1282_v52 }
 0x8f2   :  { %v2739_v30 = vpop.eup %2289 }
 0x8f3   :  { %v1302_v31 = vsel %vm62_vm0, %v2739_v30, 0.0  ;;  %v2745_v16 = vpop.eup %2291 }
 0x8f4   :  { %1303 = vadd.xlane.f32.xlu0 %v1302_v31  ;;  %v1287_v42 = vsel %vm62_vm0, %v2745_v16, 0.0  ;;  %v2294_v53 = vpop.eup %2293 }
 0x8f5   :  { %v1284_v24 = vsel %vm62_vm0, %v2294_v53, 0.0  ;;  %v2750_v45 = vpop.eup %2295 }
 0x8f6   :  { %v1293_v43 = vsel %vm62_vm0, %v2750_v45, 0.0  ;;  %v2754_v56 = vpop.eup %2297 }
 0x8f7   :  { %v1290_v46 = vsel %vm62_vm0, %v2754_v56, 0.0  ;;  %v2758_v47 = vpop.eup %2299 }
 0x8f8   :  { %v1299_v11 = vsel %vm62_vm0, %v2758_v47, 0.0  ;;  %v2762_v0 = vpop.eup %2301 }
 0x8f9   :  { %v1296_v57 = vsel %vm62_vm0, %v2762_v0, 0.0  ;;  %v2766_v62 = vpop.eup %2303 }
 0x8fa   :  { %v1305_v3 = vsel %vm62_vm0, %v2766_v62, 0.0 }
 0x90a   :  { %1352 = vrot.lane.b32.xlu0 %v210_v10, %s2388_s16 }
 0x90f   :  { %1288 = vadd.xlane.f32.xlu1 %v1287_v42 }
 0x913   :  { %1285 = vadd.xlane.f32.xlu1 %v1284_v24 }
 0x917   :  { %1294 = vadd.xlane.f32.xlu1 %v1293_v43 }
 0x91b   :  { %1291 = vadd.xlane.f32.xlu1 %v1290_v46 }
 0x91f   :  { %1300 = vadd.xlane.f32.xlu1 %v1299_v11 }
 0x923   :  { %1297 = vadd.xlane.f32.xlu1 %v1296_v57 }
 0x927   :  { %1306 = vadd.xlane.f32.xlu1 %v1305_v3 }
 0x938   :  { %1354 = vrot.lane.b32.xlu1 %v211_v49, %s2388_s16  ;;  %s2392_s16 = smov [#allocation5]  }
 0x939   :  { %s1882_s17 = sshll.u32 %s2392_s16, 4  ;;  %s1883_s17 = int_to_ptr.vmem [resolvable:$true] %s1882_s17 }
 0x93a   :  { %s2361_s18 = scalar_lea.vmem %s1883_s17, 256  ;;  %p2366_p6 = scmp.lt.s32.totalorder %s1883_s17, %s1883_s17 }
 0x93b   :  { %p2362_p5 = scmp.ne.s32.totalorder %s1883_s17, %s2361_s18  ;;  %p2367_p7 = scmp.lt.s32.totalorder %s2361_s18, %s2361_s18 }
 0x93c   :  { %1517 = vrot.lane.b32.xlu1 %v2329_v17, %s2389_s1 }
 0x93d   :  { %p2368_p8 = por %p2367_p7, %p2366_p6 }
 0x93f   :  { %p2369_p9 = pnand %p2368_p8, %p2362_p5 }
 0x940   :  { %1515 = vrot.lane.b32.xlu1 %v2330_v7, %s2389_s1 }
 0x944   :  { %1513 = vrot.lane.b32.xlu1 %v2331_v1, %s2389_s1 }
 0x948   :  { %1511 = vrot.lane.b32.xlu1 %v2332_v19, %s2389_s1  ;;  %v2333_v19 = vld [vmem:[#allocation2 + $0x50] sm:$0xff] }
 0x959   :  { %v1359_v60 = vpop.permute.xlu1 %1358 }
 0x95a   :  { %2176 = vmatprep.subr.mxu0 %v1359_v60 }
 0x95b   :  { %2177 = vmatpush3.msra.mxu0 %v1359_v60 }
 0x95d   :  { %v1357_v13 = vpop.permute.xlu1 %1356 }
 0x95e   :  { %2178 = vmatprep.subr.mxu0 %v1357_v13 }
 0x95f   :  { %2179 = vmatpush3.msra.mxu0 %v1357_v13  ;;  %v2334_v13 = vld [vmem:[#allocation2 + $0x58] sm:$0xff] }
 0x97d   :  { %v1304_v21 = vpop.xlane.xlu0 %1303 }
 0x981   :  { %v1353_v36 = vpop.permute.xlu0 %1352 }
 0x998   :  { %v1289_v23 = vpop.xlane.xlu1 %1288 }
 0x999   :  { %2305 = vrcp.f32 %v1289_v23 }
 0x99c   :  { %v1286_v50 = vpop.xlane.xlu1 %1285 }
 0x99d   :  { %2307 = vrcp.f32 %v1286_v50 }
 0x9a0   :  { %v1295_v61 = vpop.xlane.xlu1 %1294 }
 0x9a1   :  { %2309 = vrcp.f32 %v1295_v61 }
 0x9a4   :  { %v1292_v6 = vpop.xlane.xlu1 %1291 }
 0x9a5   :  { %2311 = vrcp.f32 %v1292_v6 }
 0x9a6   :  { %2313 = vrcp.f32 %v1304_v21  ;;  %v2306_v54 = vpop.eup %2305 }
 0x9a7   :  { %v1317_v22 = vmul.f32 %v2306_v54, %v1289_v23 }
 0x9a8   :  { %v1301_v4 = vpop.xlane.xlu1 %1300 }
 0x9a9   :  { %2315 = vrcp.f32 %v1301_v4  ;;  %v1325_v63 = vsub.f32 2.0, %v1317_v22  ;;  %v2338_v22 = vld [vmem:[#allocation2 + $0x68] sm:$0xff] }
 0x9aa   :  { %v2308_v55 = vpop.eup %2307 }
 0x9ab   :  { %v1316_v35 = vmul.f32 %v2308_v55, %v1286_v50  ;;  %v1333_v29 = vmul.f32 %v2306_v54, %v1325_v63  ;;  %v2339_v63 = vld [vmem:[#allocation2 + $0x78] sm:$0xff] }
 0x9ac   :  { %v1298_v9 = vpop.xlane.xlu1 %1297 }
 0x9ad   :  { %v1324_v48 = vsub.f32 2.0, %v1316_v35  ;;  %2317 = vrcp.f32 %v1298_v9  ;;  %v1341_v25 = vmul.f32 %v2745_v16, %v1333_v29 }
 0x9ae   :  { %v2310_v59 = vpop.eup %2309 }
 0x9af   :  { %v1332_v8 = vmul.f32 %v2308_v55, %v1324_v48  ;;  %v1319_v14 = vmul.f32 %v2310_v59, %v1295_v61  ;;  %v2335_v61 = vld [vmem:[#allocation2 + $0x40] sm:$0xff] }
 0x9b0   :  { %v1307_v20 = vpop.xlane.xlu1 %1306 }
 0x9b1   :  { %v1340_v18 = vmul.f32 %v2294_v53, %v1332_v8  ;;  %2319 = vrcp.f32 %v1307_v20  ;;  %v1327_v32 = vsub.f32 2.0, %v1319_v14 }
 0x9b2   :  { %v2312_v27 = vpop.eup %2311 }
 0x9b3   :  { %v2314_v28 = vpop.eup %2313  ;;  %v1318_v31 = vmul.f32 %v2312_v27, %v1292_v6  ;;  %2184 = vmatprep.mubr.msk.f32.mxu0 %vm62_vm0, %v1340_v18  ;;  %v1335_v39 = vmul.f32 %v2310_v59, %v1327_v32  ;;  %v2336_v6 = vld [vmem:[#allocation2 + $0x60] sm:$0xff]  ;;  %v2340_v18 = vld [vmem:[#allocation2 + $0x70] sm:$0xff] }
 0x9b4   :  { %v1355_v34 = vpop.permute.xlu1 %1354  ;;  %v1322_v38 = vmul.f32 %v2314_v28, %v1304_v21 }
 0x9b5   :  { %v1326_v33 = vsub.f32 2.0, %v1318_v31  ;;  %2180 = vmatprep.subr.mxu0 %v1355_v34  ;;  %v1343_v15 = vmul.f32 %v2750_v45, %v1335_v39  ;;  %v1957_v31 = vld [vmem:[#allocation2 + $0xe8] ss:$0 sm:$0xff] }
 0x9b6   :  { %v2316_v37 = vpop.eup %2315  ;;  %2181 = vmatpush3.msra.mxu0 %v1355_v34  ;;  %v1330_v2 = vsub.f32 2.0, %v1322_v38 }
 0x9b7   :  { %v1334_v44 = vmul.f32 %v2312_v27, %v1326_v33  ;;  %v1321_v26 = vmul.f32 %v2316_v37, %v1301_v4  ;;  %2182 = vmatprep.subr.mxu0 %v1353_v36  ;;  %v2337_v4 = vld [vmem:[#allocation2 + $0x48] sm:$0xff] }
 0x9b8   :  { %2183 = vmatpush3.msra.mxu0 %v1353_v36  ;;  %v1338_v53 = vmul.f32 %v2314_v28, %v1330_v2  ;;  %v1518_v3 = vpop.permute.xlu1 %1517 }
 0x9b9   :  { %v1342_v40 = vmul.f32 %v2754_v56, %v1334_v44  ;;  %2185 = vmatmul.mubr.msk.f32.vlgmr.msra.gmra.mxu0 %vm62_vm0, %v1341_v25  ;;  %v1329_v12 = vsub.f32 2.0, %v1321_v26  ;;  %2196 = vmatprep.subr.mxu0 %v1518_v3 }
 0x9ba   :  { %v2318_v10 = vpop.eup %2317  ;;  %v1346_v11 = vmul.f32 %v2739_v30, %v1338_v53  ;;  %2197 = vmatpush3.msra.mxu0 %v1518_v3  ;;  %v1647_v53 = vld [vmem:[#allocation2 + $0x88] sm:$0xff] }
 0x9bb   :  { %v1320_v41 = vmul.f32 %v2318_v10, %v1298_v9  ;;  %2187 = vmatprep.mubr.msk.f32.mxu0 %vm62_vm0, %v1342_v40  ;;  %v1337_v42 = vmul.f32 %v2316_v37, %v1329_v12 }
 0x9bd   :  { %v1328_v51 = vsub.f32 2.0, %v1320_v41  ;;  %2188 = vmatmul.mubr.msk.f32.gmra.mxu0 %vm62_vm0, %v1343_v15  ;;  %v1345_v46 = vmul.f32 %v2758_v47, %v1337_v42  ;;  %v1649_v42 = vld [vmem:[#allocation2 + $0x98] sm:$0xff] }
 0x9be   :  { %v2320_v16 = vpop.eup %2319  ;;  %2207 = vmatprep.subr.mxu1 %v1649_v42 }
 0x9bf   :  { %v1336_v52 = vmul.f32 %v2318_v10, %v1328_v51  ;;  %v1323_v24 = vmul.f32 %v2320_v16, %v1307_v20  ;;  %2208 = vmatpush3.msra.mxu1 %v1649_v42  ;;  %v1969_v42 = vld [vmem:[#allocation2 + $0xef] ss:$0 sm:$0xff] }
 0x9c1   :  { %v1344_v43 = vmul.f32 %v2762_v0, %v1336_v52  ;;  %v1331_v56 = vsub.f32 2.0, %v1323_v24  ;;  %v1516_v0 = vpop.permute.xlu1 %1515  ;;  %v1646_v52 = vld [vmem:[#allocation2 + $0x80] sm:$0xff]  ;;  %v1745_v24 = vld [vmem:[#allocation2 + $0xd8] sm:$0xff] }
 0x9c2   :  { %2198 = vmatprep.subr.mxu0 %v1516_v0 }
 0x9c3   :  { %v1339_v57 = vmul.f32 %v2320_v16, %v1331_v56  ;;  %2190 = vmatprep.mubr.msk.f32.mxu0 %vm62_vm0, %v1344_v43  ;;  %2199 = vmatpush3.msra.mxu0 %v1516_v0  ;;  %v1744_v43 = vld [vmem:[#allocation2 + $0xd0] sm:$0xff]  ;;  %v1743_v56 = vld [vmem:[#allocation2 + $0xc8] sm:$0xff] }
 0x9c4   :  { %2191 = vmatmul.mubr.msk.f32.gmra.mxu0 %vm62_vm0, %v1345_v46  ;;  %v1742_v46 = vld [vmem:[#allocation2 + $0xc0] sm:$0xff] }
 0x9c5   :  { %v1347_v45 = vmul.f32 %v2766_v62, %v1339_v57  ;;  %2193 = vmatprep.mubr.msk.f32.mxu0 %vm62_vm0, %v1346_v11  ;;  %v1514_v47 = vpop.permute.xlu1 %1513 }
 0x9c6   :  { %2200 = vmatprep.subr.mxu0 %v1514_v47 }
 0x9c7   :  { %2201 = vmatpush3.msra.mxu0 %v1514_v47 }
 0x9c8   :  { %2194 = vmatmul.mubr.msk.f32.gmra.mxu0 %vm62_vm0, %v1347_v45 }
 0x9c9   :  { %v1512_v30 = vpop.permute.xlu1 %1511 }
 0x9ca   :  { %2202 = vmatprep.subr.mxu0 %v1512_v30 }
 0x9cb   :  { %2203 = vmatpush3.msra.mxu0 %v1512_v30 }
 0x9cc   :  { %2218 = vmatprep.subr.mxu0 %v1745_v24 }
 0xa79   :  { %v2186_v49 = vpop.f32.mrf.mxu0 }
 0xa7a   :  { %v1494_v55 = vmul.f32 %v2337_v4, %v2186_v49  ;;  %v1960_v49 = vld [vmem:[#allocation2 + $0xec] ss:$0 sm:$0xff] }
 0xa7b   :  { %v1454_v17 = vpop.f32.mrf.mxu0 }
 0xa7c   :  { %v1493_v21 = vmul.f32 %v2335_v61, %v1454_v17  ;;  %v1740_v61 = vld [vmem:[#allocation2 + $0xb0] sm:$0xff] }
 0xa7d   :  { %v2189_v7 = vpop.f32.mrf.mxu0 }
 0xa7e   :  { %v1496_v23 = vmul.f32 %v2334_v13, %v2189_v7 }
 0xa7f   :  { %v1464_v62 = vpop.f32.mrf.mxu0 }
 0xa80   :  { %v1495_v60 = vmul.f32 %v2333_v19, %v1464_v62  ;;  %v1502_v59 = vadd.f32 %v1496_v23, %v1494_v55  ;;  %v1961_v19 = vld [vmem:[#allocation2 + $0xed] ss:$0 sm:$0xff] }
 0xa82   :  { %v1501_v48 = vadd.f32 %v1495_v60, %v1493_v21  ;;  %v1739_v21 = vld [vmem:[#allocation2 + $0xa8] sm:$0xff] }
 0xa84   :  { %v2192_v1 = vpop.f32.mrf.mxu0 }
 0xa85   :  { %v1498_v35 = vmul.f32 %v2338_v22, %v2192_v1 }
 0xa86   :  { %v1474_v50 = vpop.f32.mrf.mxu0 }
 0xa87   :  { %v1497_v54 = vmul.f32 %v2336_v6, %v1474_v50  ;;  %v1504_v28 = vadd.f32 %v1502_v59, %v1498_v35  ;;  %v1741_v50 = vld [vmem:[#allocation2 + $0xb8] sm:$0xff]  ;;  %v1738_v6 = vld [vmem:[#allocation2 + $0xa0] sm:$0xff]  ;;  %v1965_v59 = vld [vmem:[#allocation2 + $0xe9] ss:$0 sm:$0xff] }
 0xa88   :  { %v2195_v9 = vpop.f32.mrf.mxu0 }
 0xa89   :  { %v1500_v8 = vmul.f32 %v2339_v63, %v2195_v9  ;;  %v1503_v20 = vadd.f32 %v1501_v48, %v1497_v54  ;;  %v1962_v54 = vld [vmem:[#allocation2 + $0xe0] ss:$0 sm:$0xff] }
 0xa8a   :  { %v1484_v14 = vpop.f32.mrf.mxu0 }
 0xa8b   :  { %v1499_v27 = vmul.f32 %v2340_v18, %v1484_v14  ;;  %v1506_v32 = vadd.f32 %v1504_v28, %v1500_v8 }
 0xa8d   :  { %v1505_v29 = vadd.f32 %v1503_v20, %v1499_v27 }
 0xa8f   :  { %2204 = vmatprep.mubr.msk.f32.mxu0 %vm62_vm0, %v1505_v29 }
 0xa90   :  { %2205 = vmatmul.mubr.msk.f32.vlgmr.msra.gmra.mxu0 %vm62_vm0, %v1506_v32 }
 0xa91   :  { %2219 = vmatpush3.msra.mxu0 %v1745_v24 }
 0xa92   :  { %2220 = vmatprep.subr.mxu0 %v1744_v43 }
 0xa93   :  { %2221 = vmatpush3.msra.mxu0 %v1744_v43 }
 0xa94   :  { %2222 = vmatprep.subr.mxu0 %v1743_v56 }
 0xa95   :  { %2223 = vmatpush3.msra.mxu0 %v1743_v56 }
 0xa96   :  { %2224 = vmatprep.subr.mxu0 %v1742_v46 }
 0xa97   :  { %2225 = vmatpush3.msra.mxu0 %v1742_v46 }
 0xa98   :  { %2226 = vmatprep.subr.mxu0 %v1741_v50 }
 0xa99   :  { %2227 = vmatpush3.msra.mxu0 %v1741_v50 }
 0xa9a   :  { %2228 = vmatprep.subr.mxu0 %v1740_v61 }
 0xa9b   :  { %2229 = vmatpush3.msra.mxu0 %v1740_v61 }
 0xa9c   :  { %2230 = vmatprep.subr.mxu0 %v1739_v21 }
 0xa9d   :  { %2231 = vmatpush3.msra.mxu0 %v1739_v21 }
 0xa9e   :  { %2232 = vmatprep.subr.mxu0 %v1738_v6 }
 0xa9f   :  { %2233 = vmatpush3.msra.mxu0 %v1738_v6 }
 0xb50   :  { %v2206_v34 = vpop.f32.mrf.mxu0 }
 0xb51   :  { %v1601_v33 = vadd.f32 %v2206_v34, %v1957_v31 }
 0xb52   :  { %v1595_v37 = vpop.f32.mrf.mxu0 }
 0xb53   :  { %v1596_v38 = vadd.f32 %v1957_v31, %v1595_v37  ;;  %v1605_v36 = vadd.f32 %v1601_v33, %v2696_v5 }
 0xb55   :  { %v1611_v25 = vsel %vm62_vm0, %v1605_v36, 0.0  ;;  %v1604_v39 = vadd.f32 %v1596_v38, %v2692_v58  ;;  %v1648_v58 = vld [vmem:[#allocation2 + $0x90] sm:$0xff] }
 0xb56   :  { %1612 = vadd.xlane.f32.xlu0 %v1611_v25  ;;  %2209 = vmatprep.subr.mxu1 %v1648_v58 }
 0xb57   :  { %v1608_v44 = vsel %vm62_vm0, %v1604_v39, 0.0  ;;  %2210 = vmatpush3.msra.mxu1 %v1648_v58 }
 0xb58   :  { %1609 = vadd.xlane.f32.xlu1 %v1608_v44  ;;  %2211 = vmatprep.subr.mxu1 %v1647_v53 }
 0xb59   :  { %2212 = vmatpush3.msra.mxu1 %v1647_v53 }
 0xb5a   :  { %2213 = vmatprep.subr.mxu1 %v1646_v52 }
 0xb5b   :  { %2214 = vmatpush3.msra.mxu1 %v1646_v52 }
 0xbdf   :  { %v1613_v26 = vpop.xlane.xlu0 %1612 }
 0xbe0   :  { %v1615_v40 = vmul.f32 0.03125, %v1613_v26 }
 0xbe1   :  { %v1610_v10 = vpop.xlane.xlu1 %1609 }
 0xbe2   :  { %v1617_v12 = vsub.f32 %v1605_v36, %v1615_v40  ;;  %v1614_v2 = vmul.f32 0.03125, %v1610_v10 }
 0xbe4   :  { %v1616_v15 = vsub.f32 %v1604_v39, %v1614_v2  ;;  %v1619_v41 = vmul.f32 %v1617_v12, %v1617_v12 }
 0xbe6   :  { %v1623_v51 = vsel %vm62_vm0, %v1619_v41, 0.0  ;;  %v1618_v16 = vmul.f32 %v1616_v15, %v1616_v15 }
 0xbe7   :  { %1624 = vadd.xlane.f32.xlu0 %v1623_v51  ;;  %v1968_v51 = vld [vmem:[#allocation2 + $0xee] ss:$0 sm:$0xff] }
 0xbe8   :  { %v1620_v5 = vsel %vm62_vm0, %v1618_v16, 0.0 }
 0xbe9   :  { %1621 = vadd.xlane.f32.xlu1 %v1620_v5 }
 0xc70   :  { %v1625_v11 = vpop.xlane.xlu0 %1624 }
 0xc71   :  { %v1627_v57 = vmul.f32 0.03125, %v1625_v11 }
 0xc72   :  { %v1622_v45 = vpop.xlane.xlu1 %1621 }
 0xc73   :  { %v1629_v3 = vadd.f32 1e-05, %v1627_v57  ;;  %v1626_v0 = vmul.f32 0.03125, %v1622_v45 }
 0xc75   :  { %2321 = vrsqrt.f32 %v1629_v3  ;;  %v1628_v47 = vadd.f32 1e-05, %v1626_v0 }
 0xc77   :  { %2323 = vrsqrt.f32 %v1628_v47 }
 0xc82   :  { %v2322_v30 = vpop.eup %2321 }
 0xc83   :  { %v1633_v17 = vmul.f32 %v2322_v30, %v1617_v12 }
 0xc84   :  { %v2324_v7 = vpop.eup %2323 }
 0xc85   :  { %v1632_v62 = vmul.f32 %v2324_v7, %v1616_v15  ;;  %v1639_v1 = vmul.f32 %v1960_v49, %v1633_v17 }
 0xc87   :  { %v1638_v60 = vmul.f32 %v1960_v49, %v1632_v62  ;;  %v1645_v23 = vadd.f32 %v1961_v19, %v1639_v1 }
 0xc89   :  { %v1644_v13 = vadd.f32 %v1961_v19, %v1638_v60 }
 0xc8b   :  { %2215 = vmatprep.mubr.msk.f32.mxu1 %vm62_vm0, %v1644_v13 }
 0xc8c   :  { %2216 = vmatmul.mubr.msk.f32.vlgmr.msra.gmra.mxu1 %vm62_vm0, %v1645_v23 }
 0xd4c   :  { %v2217_v4 = vpop.f32.mrf.mxu1 }
 0xd4d   :  { %v1733_v55 = vadd.f32 %v2217_v4, %v1962_v54 }
 0xd4e   :  { %v1727_v22 = vpop.f32.mrf.mxu1 }
 0xd4f   :  { %v1728_v35 = vadd.f32 %v1962_v54, %v1727_v22  ;;  %v1737_v48 = vmax.f32 %v1733_v55, 0.0 }
 0xd51   :  { %v1736_v9 = vmax.f32 %v1728_v35, 0.0 }
 0xd53   :  { %2234 = vmatprep.mubr.msk.f32.mxu0 %vm1751_vm2, %v1736_v9 }
 0xd54   :  { %2235 = vmatmul.mubr.msk.f32.vlgmr.msra.gmra.mxu0 %vm1751_vm2, %v1737_v48 }
 0xe14   :  { %v2236_v63 = vpop.f32.mrf.mxu0 }
 0xe15   :  { %v1830_v8 = vadd.f32 %v2236_v63, %v1965_v59 }
 0xe16   :  { %v1824_v14 = vpop.f32.mrf.mxu0 }
 0xe17   :  { %v1825_v20 = vadd.f32 %v1965_v59, %v1824_v14  ;;  %v1834_v18 = vadd.f32 %v1830_v8, %v1645_v23 }
 0xe19   :  { %v1833_v27 = vadd.f32 %v1825_v20, %v1644_v13  ;;  %v1840_v28 = vsel %vm62_vm0, %v1834_v18, 0.0 }
 0xe1a   :  { %1841 = vadd.xlane.f32.xlu0 %v1840_v28 }
 0xe1b   :  { %v1837_v29 = vsel %vm62_vm0, %v1833_v27, 0.0 }
 0xe1c   :  { %1838 = vadd.xlane.f32.xlu1 %v1837_v29 }
 0xea3   :  { %v1842_v32 = vpop.xlane.xlu0 %1841 }
 0xea4   :  { %v1844_v31 = vmul.f32 0.03125, %v1842_v32 }
 0xea5   :  { %v1839_v34 = vpop.xlane.xlu1 %1838 }
 0xea6   :  { %v1846_v33 = vsub.f32 %v1834_v18, %v1844_v31  ;;  %v1843_v37 = vmul.f32 0.03125, %v1839_v34 }
 0xea8   :  { %v1845_v38 = vsub.f32 %v1833_v27, %v1843_v37  ;;  %v1848_v36 = vmul.f32 %v1846_v33, %v1846_v33 }
 0xeaa   :  { %v1852_v25 = vsel %vm62_vm0, %v1848_v36, 0.0  ;;  %v1847_v39 = vmul.f32 %v1845_v38, %v1845_v38 }
 0xeab   :  { %1853 = vadd.xlane.f32.xlu0 %v1852_v25 }
 0xeac   :  { %v1849_v44 = vsel %vm62_vm0, %v1847_v39, 0.0 }
 0xead   :  { %1850 = vadd.xlane.f32.xlu1 %v1849_v44 }
 0xf34   :  { %v1854_v26 = vpop.xlane.xlu0 %1853 }
 0xf35   :  { %v1856_v40 = vmul.f32 0.03125, %v1854_v26 }
 0xf36   :  { %v1851_v10 = vpop.xlane.xlu1 %1850 }
 0xf37   :  { %v1858_v12 = vadd.f32 1e-05, %v1856_v40  ;;  %v1855_v2 = vmul.f32 0.03125, %v1851_v10 }
 0xf39   :  { %2325 = vrsqrt.f32 %v1858_v12  ;;  %v1857_v15 = vadd.f32 1e-05, %v1855_v2 }
 0xf3b   :  { %2327 = vrsqrt.f32 %v1857_v15 }
 0xf46   :  { %v2326_v41 = vpop.eup %2325 }
 0xf47   :  { %v1862_v16 = vmul.f32 %v2326_v41, %v1846_v33 }
 0xf48   :  { %v2328_v5 = vpop.eup %2327 }
 0xf49   :  { %v1861_v58 = vmul.f32 %v2328_v5, %v1845_v38  ;;  %v1868_v53 = vmul.f32 %v1968_v51, %v1862_v16 }
 0xf4b   :  { %v1867_v52 = vmul.f32 %v1968_v51, %v1861_v58  ;;  %v1874_v24 = vadd.f32 %v1969_v42, %v1868_v53 }
 0xf4d   :  { %v1873_v43 = vadd.f32 %v1969_v42, %v1867_v52  ;;  %1876 = vst.msk [vmem:[#allocation5 + $0x8] sm:$0xff] %vm62_vm0, %v1874_v24 }
 0xf4f   :  { %1875 = vst.msk [vmem:[#allocation5] sm:$0xff] %vm62_vm0, %v1873_v43 }
 0xf50   :  { %2372 = shalt.err (!%p2369_p9)
}
 0xf51   :  { %1888 = dma.vmem_to_hbm [thread:$0]  %s1883_s17, 256, %s2815_s2, [#allocation4], %s2386_s12, %s2386_s12, %s2387_s13  }
 0xf52   :  { %2383 = dma.done.wait [#allocation4], 256  }
 0xf53   :  { %2384 = vsyncadd [#allocation4], 4294967040 }
 0xf54   :  { %1892 = vsyncpa [#allocation3], 1 }
 0xf55   :  { %1893 = vsyncpa [#allocation4], 1 }

</bundles_post_ra>
